<compile_context>
chip_gen: v5e
topology: v5e:2x2
jax: 0.10.0
libtpu: 0.0.40
codegen_flags: <defaults>
</compile_context>

<pallas_src>
import functools

import jax
import jax.numpy as jnp
from jax import lax
from jax.experimental import pallas as pl
from jax.experimental.pallas import tpu as pltpu


# -----------------------------------------------------------------------------
# Kernel: one batch block per grid step; everything in lane-dense (bb, C*L) layout.
# -----------------------------------------------------------------------------
def basic_block_kernel(x_ref,               # (bb, C*L) f32  lane-dense NCL input slab
                       w1_ref, b1_ref,      # (C*L, C*L) bf16 structured conv1 (BN1 scale folded), (1, C*L) f32 bias
                       w2_ref, b2_ref,      # same for conv2 / BN2
                       f1w_ref, f1b_ref,    # (Cr, C*L) f32 pooled fc1 weights (already /L), (1, Cr) f32 bias
                       f2w_ref, f2b_ref,    # (Cr, C*L) f32 lane-expanded fc2 weights, (1, C*L) f32 bias
                       o_ref):              # (bb, C*L) f32  lane-dense output slab
    x = x_ref[...]                                                    # (bb, CL) f32

    # ---- conv1 (+ folded BN1 scale) -> BN1 bias -> SiLU ----
    h1 = jnp.dot(x.astype(jnp.bfloat16), w1_ref[...],
                 preferred_element_type=jnp.float32) + b1_ref[...]
    h1 = h1 * jax.nn.sigmoid(h1)

    # ---- conv2 (+ folded BN2 scale) -> BN2 bias ----
    h2 = jnp.dot(h1.astype(jnp.bfloat16), w2_ref[...],
                 preferred_element_type=jnp.float32) + b2_ref[...]    # (bb, CL) f32

    # ---- SE entirely on VPU/XLU/EUP (Cr is tiny): squeeze fused into f1w (/L),
    #      excite + lane-expansion fused into f2w / f2b (weight-only wrapper prep) ----
    f1w = f1w_ref[...]                                                # (Cr, CL) f32
    f1b = f1b_ref[...]                                                # (1, Cr)  f32
    f2w = f2w_ref[...]                                                # (Cr, CL) f32
    gate_pre = f2b_ref[...]                                           # (1, CL)  f32
    Cr = f1w.shape[0]                                                 # static (C // 16)
    for r in range(Cr):
        yr = jnp.sum(h2 * f1w[r:r + 1, :], axis=-1, keepdims=True)    # (bb, 1): mean-pool + fc1, f32
        yr = jnp.maximum(yr + f1b[:, r:r + 1], 0.0)                   # ReLU
        gate_pre = gate_pre + yr * f2w[r:r + 1, :]                    # fc2 (expanded over lanes)
    gate = jax.nn.sigmoid(gate_pre)                                   # (bb, CL) f32

    # ---- SE scale + residual (identity; downsample=None) + final SiLU ----
    out = h2 * gate + x
    o_ref[...] = (out * jax.nn.sigmoid(out)).astype(o_ref.dtype)      # one dense store


# -----------------------------------------------------------------------------
# Wrapper-side (weight-only, one-time) prep.
# -----------------------------------------------------------------------------
def _conv3_as_dense_matrix(w, bn_scale, L):
    """Build the (Cin*L, Cout*L) block-banded matrix W_struct (f32) such that
    x_flat @ W_struct == Conv1d(k=3, pad=1, stride=1, bias=False) followed by the
    BN scale, with x_flat / out_flat in channel-major (c*L + l) lane-dense layout."""
    Cout, Cin, K = w.shape
    w = w * bn_scale[:, None, None]                       # fold BN scale in f32
    li = jnp.arange(L)[:, None]                           # input position
    lo = jnp.arange(L)[None, :]                           # output position
    k = li - lo + 1                                       # tap index mapping li -> lo
    valid = ((k >= 0) & (k < K)).astype(w.dtype)          # zero padding handled here
    kc = jnp.clip(k, 0, K - 1)
    big = w[:, :, kc] * valid[None, None]                 # (Cout, Cin, Li, Lo)
    big = jnp.transpose(big, (1, 2, 0, 3)).reshape(Cin * L, Cout * L)
    return big


def _pick_batch_block(B, CL, vmem_budget_bytes=8 << 20):
    """Per the perf review: no forced 2-way split.  v5e/v6e are single-TC (the grid is
    a serial loop), and v7x only benefits from a cross-core split once per-core work
    exceeds the per-step fixed cost — so take ONE grid step whenever the whole batch
    block fits comfortably in VMEM; otherwise the largest divisor of B that does
    (sublane dim either == B or a multiple of 8 for clean tiling)."""
    per_row = 4 * CL * 4          # f32 in + out blocks, double buffered
    cap = max(1, vmem_budget_bytes // per_row)
    best = None
    for d in range(1, B + 1):
        if B % d == 0 and d <= cap and (d == B or d % 8 == 0):
            best = d
    return best if best is not None else B


def basic_block_pallas(x_ncl, params, *, batch_block=None):
    """x_ncl: (B, C, L) float32, PyTorch Conv1d layout.  Wrapper does only free
    metadata reshapes (B, C, L) <-> (B, C*L) and weight-only prep (no activation
    pads / transposes / HBM round trips)."""
    B, C, L = x_ncl.shape
    CL = C * L
    Cr = params["fc1_w"].shape[0]
    eps = 1e-5

    # ---- fold BN (eval mode) ----
    bn1_scale = params["bn1_gamma"] / jnp.sqrt(params["bn1_var"] + eps)
    bn1_bias = params["bn1_beta"] - params["bn1_mean"] * bn1_scale
    bn2_scale = params["bn2_gamma"] / jnp.sqrt(params["bn2_var"] + eps)
    bn2_bias = params["bn2_beta"] - params["bn2_mean"] * bn2_scale

    # Structured conv matrices (f32 build + BN-scale fold, single bf16 cast at the end).
    w1big = _conv3_as_dense_matrix(params["w1"], bn1_scale, L).astype(jnp.bfloat16)
    w2big = _conv3_as_dense_matrix(params["w2"], bn2_scale, L).astype(jnp.bfloat16)
    b1vec = jnp.repeat(bn1_bias, L)[None, :].astype(jnp.float32)          # (1, CL)
    b2vec = jnp.repeat(bn2_bias, L)[None, :].astype(jnp.float32)          # (1, CL)

    # SE: squeeze (mean over L) folded into fc1 weights; excite expanded over lanes.
    f1w = jnp.repeat(params["fc1_w"] / L, L, axis=1).astype(jnp.float32)  # (Cr, CL)
    f1b = params["fc1_b"][None, :].astype(jnp.float32)                    # (1, Cr)
    f2w = jnp.repeat(params["fc2_w"].T, L, axis=1).astype(jnp.float32)    # (Cr, CL)
    f2b = jnp.repeat(params["fc2_b"], L)[None, :].astype(jnp.float32)     # (1, CL)

    x_flat = x_ncl.reshape(B, CL)                      # free metadata reshape
    bb = batch_block if batch_block is not None else _pick_batch_block(B, CL)
    assert B % bb == 0, (B, bb)

    const2 = lambda shape: pl.BlockSpec(shape, lambda i: (0, 0))   # grid-invariant blocks

    out_flat = pl.pallas_call(
        basic_block_kernel,
        out_shape=jax.ShapeDtypeStruct((B, CL), x_ncl.dtype),
        grid_spec=pltpu.PrefetchScalarGridSpec(
            num_scalar_prefetch=0,
            grid=(B // bb,),
            in_specs=[
                pl.BlockSpec((bb, CL), lambda i: (i, 0)),          # x, lane-dense slab
                const2((CL, CL)), const2((1, CL)),                 # conv1 / bn1
                const2((CL, CL)), const2((1, CL)),                 # conv2 / bn2
                const2((Cr, CL)), const2((1, Cr)),                 # SE fc1 (pooled)
                const2((Cr, CL)), const2((1, CL)),                 # SE fc2 (expanded)
            ],
            out_specs=pl.BlockSpec((bb, CL), lambda i: (i, 0)),    # lane-dense output
        ),
        compiler_params=pltpu.CompilerParams(
            dimension_semantics=("parallel",),
            vmem_limit_bytes=32 * 1024 * 1024,   # working set ~3 MiB; safe on v7x (64 MiB)
        ),
    )(x_flat, w1big, b1vec, w2big, b2vec, f1w, f1b, f2w, f2b)

    return out_flat.reshape(B, C, L)                   # free metadata reshape


# -----------------------------------------------------------------------------
# Pure-JAX f32 reference (matches the PyTorch eval-mode forward) for verification.
# -----------------------------------------------------------------------------
def basic_block_ref(x, params):
    eps = 1e-5

    def conv3(inp, w):
        return lax.conv_general_dilated(inp, w, window_strides=(1,),
                                        padding=((1, 1),),
                                        dimension_numbers=("NCH", "OIH", "NCH"))

    def bn(inp, g, b, m, v):
        s = g / jnp.sqrt(v + eps)
        return inp * s[None, :, None] + (b - m * s)[None, :, None]

    silu = lambda t: t * jax.nn.sigmoid(t)

    out = conv3(x, params["w1"])
    out = bn(out, params["bn1_gamma"], params["bn1_beta"],
             params["bn1_mean"], params["bn1_var"])
    out = silu(out)
    out = conv3(out, params["w2"])
    out = bn(out, params["bn2_gamma"], params["bn2_beta"],
             params["bn2_mean"], params["bn2_var"])
    # SE
    y = jnp.mean(out, axis=2)                                  # (B, C)
    y = jnp.maximum(y @ params["fc1_w"].T + params["fc1_b"], 0.0)
    y = jax.nn.sigmoid(y @ params["fc2_w"].T + params["fc2_b"])
    out = out * y[:, :, None]
    # downsample=None, cbam=None, dropout=identity (eval)
    out = out + x
    return silu(out)


if __name__ == "__main__":
    B, C, L = 8, 32, 16        # inplanes = planes = width = 32, SE reduction 16 -> Cr = 2
    Cr = C // 16

    key = jax.random.PRNGKey(0)
    ks = jax.random.split(key, 13)
    params = {
        "w1": jax.random.normal(ks[0], (C, C, 3), jnp.float32) * 0.1,   # (Cout, Cin, K)
        "w2": jax.random.normal(ks[1], (C, C, 3), jnp.float32) * 0.1,
        "bn1_gamma": 1.0 + 0.1 * jax.random.normal(ks[2], (C,), jnp.float32),
        "bn1_beta": 0.1 * jax.random.normal(ks[3], (C,), jnp.float32),
        "bn1_mean": 0.1 * jax.random.normal(ks[4], (C,), jnp.float32),
        "bn1_var": jnp.abs(jax.random.normal(ks[5], (C,), jnp.float32)) + 0.5,
        "bn2_gamma": 1.0 + 0.1 * jax.random.normal(ks[6], (C,), jnp.float32),
        "bn2_beta": 0.1 * jax.random.normal(ks[7], (C,), jnp.float32),
        "bn2_mean": 0.1 * jax.random.normal(ks[8], (C,), jnp.float32),
        "bn2_var": jnp.abs(jax.random.normal(ks[9], (C,), jnp.float32)) + 0.5,
        "fc1_w": jax.random.normal(ks[10], (Cr, C), jnp.float32) * 0.1,
        "fc1_b": jnp.zeros((Cr,), jnp.float32),
        "fc2_w": jax.random.normal(ks[11], (C, Cr), jnp.float32) * 0.1,
        "fc2_b": jnp.zeros((C,), jnp.float32),
    }
    x = jax.random.normal(ks[12], (B, C, L), jnp.float32)

    fwd = jax.jit(functools.partial(basic_block_pallas, params=params))
    out = jax.block_until_ready(fwd(x))

    ref = basic_block_ref(x, params)
    err = float(jnp.max(jnp.abs(out - ref)))
    assert out.shape == (B, C, L)
    # bf16 MXU operands with f32 accumulation -> loosened tolerance vs the f32 reference.
    assert jnp.allclose(out, ref, rtol=5e-2, atol=5e-2), f"max abs err = {err}"

    print("KERNEL_OK")
</pallas_src>

<mosaic_0001>
module attributes {stable_mosaic.version = 11 : i64} {
  func.func @basic_block_kernel(%arg0: i32, %arg1: memref<8x512xf32, #tpu.memory_space<vmem>>, %arg2: memref<512x512xbf16, #tpu.memory_space<vmem>>, %arg3: memref<1x512xf32, #tpu.memory_space<vmem>>, %arg4: memref<512x512xbf16, #tpu.memory_space<vmem>>, %arg5: memref<1x512xf32, #tpu.memory_space<vmem>>, %arg6: memref<2x512xf32, #tpu.memory_space<vmem>>, %arg7: memref<1x2xf32, #tpu.memory_space<vmem>>, %arg8: memref<2x512xf32, #tpu.memory_space<vmem>>, %arg9: memref<1x512xf32, #tpu.memory_space<vmem>>, %arg10: memref<8x512xf32, #tpu.memory_space<vmem>>) attributes {dimension_semantics = [#tpu.dimension_semantics<parallel>], iteration_bounds = array<i64: 1>, scalar_prefetch = 0 : i64, scratch_operands = 0 : i64, tpu.core_type = #tpu.core_type<tc>, window_params = [{transform_indices = @transform_0, window_bounds = array<i64: 8, 512>}, {pipeline_mode = #tpu.pipeline_mode<synchronous>, transform_indices = @transform_1, window_bounds = array<i64: 512, 512>}, {pipeline_mode = #tpu.pipeline_mode<synchronous>, transform_indices = @transform_2, window_bounds = array<i64: 1, 512>}, {pipeline_mode = #tpu.pipeline_mode<synchronous>, transform_indices = @transform_3, window_bounds = array<i64: 512, 512>}, {pipeline_mode = #tpu.pipeline_mode<synchronous>, transform_indices = @transform_4, window_bounds = array<i64: 1, 512>}, {pipeline_mode = #tpu.pipeline_mode<synchronous>, transform_indices = @transform_5, window_bounds = array<i64: 2, 512>}, {pipeline_mode = #tpu.pipeline_mode<synchronous>, transform_indices = @transform_6, window_bounds = array<i64: 1, 2>}, {pipeline_mode = #tpu.pipeline_mode<synchronous>, transform_indices = @transform_7, window_bounds = array<i64: 2, 512>}, {pipeline_mode = #tpu.pipeline_mode<synchronous>, transform_indices = @transform_8, window_bounds = array<i64: 1, 512>}, {transform_indices = @transform_9, window_bounds = array<i64: 8, 512>}]} {
    %c0 = arith.constant 0 : index
    %c0_0 = arith.constant 0 : index
    %0 = vector.load %arg1[%c0, %c0_0] : memref<8x512xf32, #tpu.memory_space<vmem>>, vector<8x512xf32>
    %1 = arith.truncf %0 : vector<8x512xf32> to vector<8x512xbf16>
    %c0_1 = arith.constant 0 : index
    %c0_2 = arith.constant 0 : index
    %2 = vector.load %arg2[%c0_1, %c0_2] : memref<512x512xbf16, #tpu.memory_space<vmem>>, vector<512x512xbf16>
    %cst = arith.constant dense<0.000000e+00> : vector<8x512xf32>
    %3 = tpu.matmul %1, %2, %cst {dimension_numbers = #tpu.dot_dimension_numbers<[1], [0], [0], [1], [0, 0, 1, 1], [], []>} : vector<8x512xbf16>, vector<512x512xbf16>, vector<8x512xf32> -> vector<8x512xf32>
    %c0_3 = arith.constant 0 : index
    %c0_4 = arith.constant 0 : index
    %4 = vector.load %arg3[%c0_3, %c0_4] : memref<1x512xf32, #tpu.memory_space<vmem>>, vector<1x512xf32>
    %5 = vector.broadcast %4 : vector<1x512xf32> to vector<8x512xf32>
    %6 = arith.addf %3, %5 : vector<8x512xf32>
    %7 = arith.negf %6 : vector<8x512xf32>
    %8 = math.exp %7 : vector<8x512xf32>
    %cst_5 = arith.constant 1.000000e+00 : f32
    %9 = vector.broadcast %cst_5 : f32 to vector<8x512xf32>
    %10 = arith.addf %9, %8 : vector<8x512xf32>
    %11 = arith.divf %9, %10 : vector<8x512xf32>
    %12 = arith.mulf %6, %11 : vector<8x512xf32>
    %13 = arith.truncf %12 : vector<8x512xf32> to vector<8x512xbf16>
    %c0_6 = arith.constant 0 : index
    %c0_7 = arith.constant 0 : index
    %14 = vector.load %arg4[%c0_6, %c0_7] : memref<512x512xbf16, #tpu.memory_space<vmem>>, vector<512x512xbf16>
    %cst_8 = arith.constant dense<0.000000e+00> : vector<8x512xf32>
    %15 = tpu.matmul %13, %14, %cst_8 {dimension_numbers = #tpu.dot_dimension_numbers<[1], [0], [0], [1], [0, 0, 1, 1], [], []>} : vector<8x512xbf16>, vector<512x512xbf16>, vector<8x512xf32> -> vector<8x512xf32>
    %c0_9 = arith.constant 0 : index
    %c0_10 = arith.constant 0 : index
    %16 = vector.load %arg5[%c0_9, %c0_10] : memref<1x512xf32, #tpu.memory_space<vmem>>, vector<1x512xf32>
    %17 = vector.broadcast %16 : vector<1x512xf32> to vector<8x512xf32>
    %18 = arith.addf %15, %17 : vector<8x512xf32>
    %c0_11 = arith.constant 0 : index
    %c0_12 = arith.constant 0 : index
    %19 = vector.load %arg6[%c0_11, %c0_12] : memref<2x512xf32, #tpu.memory_space<vmem>>, vector<2x512xf32>
    %c0_13 = arith.constant 0 : index
    %c0_14 = arith.constant 0 : index
    %20 = vector.load %arg7[%c0_13, %c0_14] : memref<1x2xf32, #tpu.memory_space<vmem>>, vector<1x2xf32>
    %c0_15 = arith.constant 0 : index
    %c0_16 = arith.constant 0 : index
    %21 = vector.load %arg8[%c0_15, %c0_16] : memref<2x512xf32, #tpu.memory_space<vmem>>, vector<2x512xf32>
    %c0_17 = arith.constant 0 : index
    %c0_18 = arith.constant 0 : index
    %22 = vector.load %arg9[%c0_17, %c0_18] : memref<1x512xf32, #tpu.memory_space<vmem>>, vector<1x512xf32>
    %23 = vector.extract_strided_slice %19 {offsets = [0, 0], sizes = [1, 512], strides = [1, 1]} : vector<2x512xf32> to vector<1x512xf32>
    %24 = vector.broadcast %23 : vector<1x512xf32> to vector<8x512xf32>
    %25 = arith.mulf %18, %24 : vector<8x512xf32>
    %cst_19 = arith.constant dense<0.000000e+00> : vector<8xf32>
    %26 = vector.multi_reduction <add>, %25, %cst_19 [1] : vector<8x512xf32> to vector<8xf32>
    %27 = vector.shape_cast %26 : vector<8xf32> to vector<8x1xf32>
    %28 = vector.extract_strided_slice %20 {offsets = [0, 0], sizes = [1, 1], strides = [1, 1]} : vector<1x2xf32> to vector<1x1xf32>
    %29 = vector.broadcast %28 : vector<1x1xf32> to vector<8x1xf32>
    %30 = arith.addf %27, %29 : vector<8x1xf32>
    %cst_20 = arith.constant 0.000000e+00 : f32
    %31 = vector.broadcast %cst_20 : f32 to vector<8x1xf32>
    %32 = arith.maximumf %30, %31 : vector<8x1xf32>
    %33 = vector.extract_strided_slice %21 {offsets = [0, 0], sizes = [1, 512], strides = [1, 1]} : vector<2x512xf32> to vector<1x512xf32>
    %34 = vector.broadcast %32 : vector<8x1xf32> to vector<8x512xf32>
    %35 = vector.broadcast %33 : vector<1x512xf32> to vector<8x512xf32>
    %36 = arith.mulf %34, %35 : vector<8x512xf32>
    %37 = vector.broadcast %22 : vector<1x512xf32> to vector<8x512xf32>
    %38 = arith.addf %37, %36 : vector<8x512xf32>
    %39 = vector.extract_strided_slice %19 {offsets = [1, 0], sizes = [1, 512], strides = [1, 1]} : vector<2x512xf32> to vector<1x512xf32>
    %40 = vector.broadcast %39 : vector<1x512xf32> to vector<8x512xf32>
    %41 = arith.mulf %18, %40 : vector<8x512xf32>
    %cst_21 = arith.constant dense<0.000000e+00> : vector<8xf32>
    %42 = vector.multi_reduction <add>, %41, %cst_21 [1] : vector<8x512xf32> to vector<8xf32>
    %43 = vector.shape_cast %42 : vector<8xf32> to vector<8x1xf32>
    %44 = vector.extract_strided_slice %20 {offsets = [0, 1], sizes = [1, 1], strides = [1, 1]} : vector<1x2xf32> to vector<1x1xf32>
    %45 = vector.broadcast %44 : vector<1x1xf32> to vector<8x1xf32>
    %46 = arith.addf %43, %45 : vector<8x1xf32>
    %cst_22 = arith.constant 0.000000e+00 : f32
    %47 = vector.broadcast %cst_22 : f32 to vector<8x1xf32>
    %48 = arith.maximumf %46, %47 : vector<8x1xf32>
    %49 = vector.extract_strided_slice %21 {offsets = [1, 0], sizes = [1, 512], strides = [1, 1]} : vector<2x512xf32> to vector<1x512xf32>
    %50 = vector.broadcast %48 : vector<8x1xf32> to vector<8x512xf32>
    %51 = vector.broadcast %49 : vector<1x512xf32> to vector<8x512xf32>
    %52 = arith.mulf %50, %51 : vector<8x512xf32>
    %53 = arith.addf %38, %52 : vector<8x512xf32>
    %54 = arith.negf %53 : vector<8x512xf32>
    %55 = math.exp %54 : vector<8x512xf32>
    %cst_23 = arith.constant 1.000000e+00 : f32
    %56 = vector.broadcast %cst_23 : f32 to vector<8x512xf32>
    %57 = arith.addf %56, %55 : vector<8x512xf32>
    %58 = arith.divf %56, %57 : vector<8x512xf32>
    %59 = arith.mulf %18, %58 : vector<8x512xf32>
    %60 = arith.addf %59, %0 : vector<8x512xf32>
    %61 = arith.negf %60 : vector<8x512xf32>
    %62 = math.exp %61 : vector<8x512xf32>
    %cst_24 = arith.constant 1.000000e+00 : f32
    %63 = vector.broadcast %cst_24 : f32 to vector<8x512xf32>
    %64 = arith.addf %63, %62 : vector<8x512xf32>
    %65 = arith.divf %63, %64 : vector<8x512xf32>
    %66 = arith.mulf %60, %65 : vector<8x512xf32>
    %c0_25 = arith.constant 0 : index
    %c0_26 = arith.constant 0 : index
    %67 = vector.load %arg10[%c0_25, %c0_26] : memref<8x512xf32, #tpu.memory_space<vmem>>, vector<8x512xf32>
    tpu.vector_store %arg10[%c0_25, %c0_26], %66 {strides = array<i32>} : memref<8x512xf32, #tpu.memory_space<vmem>>, vector<8x512xf32>,
    return
  }
  func.func @transform_0(%arg0: i32) -> (i32, i32) {
    %c0_i32 = arith.constant 0 : i32
    %c0_i32_0 = arith.constant 0 : i32
    return %arg0, %c0_i32 : i32, i32
  }
  func.func @transform_1(%arg0: i32) -> (i32, i32) {
    %c0_i32 = arith.constant 0 : i32
    %c0_i32_0 = arith.constant 0 : i32
    %c0_i32_1 = arith.constant 0 : i32
    return %c0_i32, %c0_i32_0 : i32, i32
  }
  func.func @transform_2(%arg0: i32) -> (i32, i32) {
    %c0_i32 = arith.constant 0 : i32
    %c0_i32_0 = arith.constant 0 : i32
    %c0_i32_1 = arith.constant 0 : i32
    return %c0_i32, %c0_i32_0 : i32, i32
  }
  func.func @transform_3(%arg0: i32) -> (i32, i32) {
    %c0_i32 = arith.constant 0 : i32
    %c0_i32_0 = arith.constant 0 : i32
    %c0_i32_1 = arith.constant 0 : i32
    return %c0_i32, %c0_i32_0 : i32, i32
  }
  func.func @transform_4(%arg0: i32) -> (i32, i32) {
    %c0_i32 = arith.constant 0 : i32
    %c0_i32_0 = arith.constant 0 : i32
    %c0_i32_1 = arith.constant 0 : i32
    return %c0_i32, %c0_i32_0 : i32, i32
  }
  func.func @transform_5(%arg0: i32) -> (i32, i32) {
    %c0_i32 = arith.constant 0 : i32
    %c0_i32_0 = arith.constant 0 : i32
    %c0_i32_1 = arith.constant 0 : i32
    return %c0_i32, %c0_i32_0 : i32, i32
  }
  func.func @transform_6(%arg0: i32) -> (i32, i32) {
    %c0_i32 = arith.constant 0 : i32
    %c0_i32_0 = arith.constant 0 : i32
    %c0_i32_1 = arith.constant 0 : i32
    return %c0_i32, %c0_i32_0 : i32, i32
  }
  func.func @transform_7(%arg0: i32) -> (i32, i32) {
    %c0_i32 = arith.constant 0 : i32
    %c0_i32_0 = arith.constant 0 : i32
    %c0_i32_1 = arith.constant 0 : i32
    return %c0_i32, %c0_i32_0 : i32, i32
  }
  func.func @transform_8(%arg0: i32) -> (i32, i32) {
    %c0_i32 = arith.constant 0 : i32
    %c0_i32_0 = arith.constant 0 : i32
    %c0_i32_1 = arith.constant 0 : i32
    return %c0_i32, %c0_i32_0 : i32, i32
  }
  func.func @transform_9(%arg0: i32) -> (i32, i32) {
    %c0_i32 = arith.constant 0 : i32
    %c0_i32_0 = arith.constant 0 : i32
    return %arg0, %c0_i32 : i32, i32
  }
}

</mosaic_0001>

<bundles_post_ra>
// kernel: basic_block_pallas.1
= control target key start
LH: loop header
LB: loop body
LE: loop exit
PB: predicated region body
PF: predicated region fallthrough
CT: control target
= control target key end

     0   :  { %s5550_s1 = inlined_call_operand.vmem [shape: bf16[512,512], index: 1, kind: input, shape index: {}]   ;;  %s5551_s0 = inlined_call_operand.vmem [shape: f32[8,512], index: 0, kind: input, shape index: {}]   ;;  %s5552_s3 = inlined_call_operand.vmem [shape: bf16[512,512], index: 3, kind: input, shape index: {}]   ;;  %s5553_s2 = inlined_call_operand.vmem [shape: f32[1,512], index: 2, kind: input, shape index: {}]   ;;  %s5554_s4 = inlined_call_operand.vmem [shape: f32[1,512], index: 4, kind: input, shape index: {}]   ;;  %s5555_s6 = inlined_call_operand.vmem [shape: f32[1,2], index: 6, kind: input, shape index: {}]   ;;  %s5556_s5 = inlined_call_operand.vmem [shape: f32[2,512], index: 5, kind: input, shape index: {}]   ;;  %s5557_s7 = inlined_call_operand.vmem [shape: f32[2,512], index: 7, kind: input, shape index: {}]   ;;  %s5558_s8 = inlined_call_operand.vmem [shape: f32[1,512], index: 8, kind: input, shape index: {}]   ;;  %s5559_s9 = inlined_call_operand.vmem [shape: f32[8,512], index: 9, kind: output, shape index: {}]  }
   0x1   :  { %v2496_v0 = vld [vmem:[%s5550_s1 + $0xe0] sm:$0xf]  ;;  %v3448_v1 = vld [vmem:[%s5550_s1 + $0xec] sm:$0xf0] }
   0x2   :  { %v2624_v2 = vld [vmem:[%s5550_s1 + $0x1e0] sm:$0xf]  ;;  %v2497_v3 = vor.u32 %v3448_v1, %v2496_v0  ;;  %v3480_v4 = vld [vmem:[%s5550_s1 + $0x1ec] sm:$0xf0] }
   0x3   :  { %v2752_v5 = vld [vmem:[%s5550_s1 + $0x2e0] sm:$0xf]  ;;  %v3512_v6 = vld [vmem:[%s5550_s1 + $0x2ec] sm:$0xf0]  ;;  %v2625_v7 = vor.u32 %v3480_v4, %v2624_v2 }
   0x4   :  { %v2753_v8 = vor.u32 %v3512_v6, %v2752_v5  ;;  %v2880_v9 = vld [vmem:[%s5550_s1 + $0x3e0] sm:$0xf]  ;;  %v3544_v10 = vld [vmem:[%s5550_s1 + $0x3ec] sm:$0xf0]  ;;  %818 = vmatpush.bf16.msra.mxu0 %v2497_v3 }
   0x5   :  { %v2480_v11 = vld [vmem:[%s5550_s1 + $0xc0] sm:$0xf]  ;;  %v2881_v12 = vor.u32 %v3544_v10, %v2880_v9  ;;  %v3444_v13 = vld [vmem:[%s5550_s1 + $0xcc] sm:$0xf0]  ;;  %831 = vmatpush.bf16.msra.mxu1 %v2625_v7 }
   0x6   :  { %v2608_v14 = vld [vmem:[%s5550_s1 + $0x1c0] sm:$0xf]  ;;  %v3476_v15 = vld [vmem:[%s5550_s1 + $0x1cc] sm:$0xf0]  ;;  %844 = vmatpush.bf16.msra.mxu2 %v2753_v8  ;;  %v2481_v16 = vor.u32 %v3444_v13, %v2480_v11 }
   0x7   :  { %v2609_v17 = vor.u32 %v3476_v15, %v2608_v14  ;;  %v2736_v18 = vld [vmem:[%s5550_s1 + $0x2c0] sm:$0xf]  ;;  %v3508_v19 = vld [vmem:[%s5550_s1 + $0x2cc] sm:$0xf0]  ;;  %857 = vmatpush.bf16.msra.mxu3 %v2881_v12 }
   0x8   :  { %v2864_v20 = vld [vmem:[%s5550_s1 + $0x3c0] sm:$0xf]  ;;  %v2737_v21 = vor.u32 %v3508_v19, %v2736_v18  ;;  %v3540_v22 = vld [vmem:[%s5550_s1 + $0x3cc] sm:$0xf0]  ;;  %819 = vmatpush.bf16.msra.mxu0 %v2481_v16 }
   0x9   :  { %v2464_v23 = vld [vmem:[%s5550_s1 + $0xa0] sm:$0xf]  ;;  %v3440_v24 = vld [vmem:[%s5550_s1 + $0xac] sm:$0xf0]  ;;  %v2865_v25 = vor.u32 %v3540_v22, %v2864_v20  ;;  %832 = vmatpush.bf16.msra.mxu1 %v2609_v17 }
   0xa   :  { %v2592_v26 = vld [vmem:[%s5550_s1 + $0x1a0] sm:$0xf]  ;;  %v3472_v27 = vld [vmem:[%s5550_s1 + $0x1ac] sm:$0xf0]  ;;  %v2465_v29 = vor.u32 %v3440_v24, %v2464_v23  ;;  %845 = vmatpush.bf16.msra.mxu2 %v2737_v21 }
   0xb   :  { %v2720_v28 = vld [vmem:[%s5550_s1 + $0x2a0] sm:$0xf]  ;;  %v3504_v30 = vld [vmem:[%s5550_s1 + $0x2ac] sm:$0xf0]  ;;  %v2593_v33 = vor.u32 %v3472_v27, %v2592_v26  ;;  %858 = vmatpush.bf16.msra.mxu3 %v2865_v25 }
   0xc   :  { %v2848_v31 = vld [vmem:[%s5550_s1 + $0x3a0] sm:$0xf]  ;;  %v3536_v32 = vld [vmem:[%s5550_s1 + $0x3ac] sm:$0xf0]  ;;  %v2721_v34 = vor.u32 %v3504_v30, %v2720_v28  ;;  %820 = vmatpush.bf16.msra.mxu0 %v2465_v29  ;;  %v3446_v28 = vld [vmem:[%s5550_s1 + $0xe4] sm:$0xf] }
   0xd   :  { %v2448_v35 = vld [vmem:[%s5550_s1 + $0x80] sm:$0xf]  ;;  %v3436_v36 = vld [vmem:[%s5550_s1 + $0x8c] sm:$0xf0]  ;;  %v2849_v38 = vor.u32 %v3536_v32, %v2848_v31  ;;  %833 = vmatpush.bf16.msra.mxu1 %v2593_v33  ;;  %v2498_v29 = vld [vmem:[%s5550_s1 + $0xf0] sm:$0xf0] }
   0xe   :  { %v2576_v37 = vld [vmem:[%s5550_s1 + $0x180] sm:$0xf]  ;;  %v3468_v39 = vld [vmem:[%s5550_s1 + $0x18c] sm:$0xf0]  ;;  %v2449_v44 = vor.u32 %v3436_v36, %v2448_v35  ;;  %846 = vmatpush.bf16.msra.mxu2 %v2721_v34  ;;  %v3478_v30 = vld [vmem:[%s5550_s1 + $0x1e4] sm:$0xf] }
   0xf   :  { %v2704_v40 = vld [vmem:[%s5550_s1 + $0x280] sm:$0xf]  ;;  %v3500_v41 = vld [vmem:[%s5550_s1 + $0x28c] sm:$0xf0]  ;;  %v2577_v45 = vor.u32 %v3468_v39, %v2576_v37  ;;  %859 = vmatpush.bf16.msra.mxu3 %v2849_v38  ;;  %v2626_v32 = vld [vmem:[%s5550_s1 + $0x1f0] sm:$0xf0] }
  0x10   :  { %v2832_v42 = vld [vmem:[%s5550_s1 + $0x380] sm:$0xf]  ;;  %v3532_v43 = vld [vmem:[%s5550_s1 + $0x38c] sm:$0xf0]  ;;  %v2705_v46 = vor.u32 %v3500_v41, %v2704_v40  ;;  %821 = vmatpush.bf16.msra.mxu0 %v2449_v44  ;;  %v3510_v33 = vld [vmem:[%s5550_s1 + $0x2e4] sm:$0xf]  ;;  %v2501_v41 = vor.u32 %v3446_v28, %v2498_v29 }
  0x11   :  { %v2432_v47 = vld [vmem:[%s5550_s1 + $0x60] sm:$0xf]  ;;  %v3432_v48 = vld [vmem:[%s5550_s1 + $0x6c] sm:$0xf0]  ;;  %v2833_v50 = vor.u32 %v3532_v43, %v2832_v42  ;;  %834 = vmatpush.bf16.msra.mxu1 %v2577_v45  ;;  %v2754_v34 = vld [vmem:[%s5550_s1 + $0x2f0] sm:$0xf0]  ;;  %v2629_v45 = vor.u32 %v3478_v30, %v2626_v32 }
  0x12   :  { %v2560_v49 = vld [vmem:[%s5550_s1 + $0x160] sm:$0xf]  ;;  %v3464_v51 = vld [vmem:[%s5550_s1 + $0x16c] sm:$0xf0]  ;;  %v2433_v56 = vor.u32 %v3432_v48, %v2432_v47  ;;  %847 = vmatpush.bf16.msra.mxu2 %v2705_v46  ;;  %v3542_v37 = vld [vmem:[%s5550_s1 + $0x3e4] sm:$0xf]  ;;  %v2757_v46 = vor.u32 %v3510_v33, %v2754_v34 }
  0x13   :  { %v2688_v52 = vld [vmem:[%s5550_s1 + $0x260] sm:$0xf]  ;;  %v3496_v53 = vld [vmem:[%s5550_s1 + $0x26c] sm:$0xf0]  ;;  %v2561_v57 = vor.u32 %v3464_v51, %v2560_v49  ;;  %860 = vmatpush.bf16.msra.mxu3 %v2833_v50  ;;  %v2882_v38 = vld [vmem:[%s5550_s1 + $0x3f0] sm:$0xf0] }
  0x14   :  { %v2816_v54 = vld [vmem:[%s5550_s1 + $0x360] sm:$0xf]  ;;  %v3528_v55 = vld [vmem:[%s5550_s1 + $0x36c] sm:$0xf0]  ;;  %v2689_v58 = vor.u32 %v3496_v53, %v2688_v52  ;;  %822 = vmatpush.bf16.msra.mxu0 %v2433_v56  ;;  %v35_v43 = vld [vmem:[%s5551_s0 + $0x18] sm:$0xff]  ;;  %v2885_v50 = vor.u32 %v3542_v37, %v2882_v38 }
  0x15   :  { %v2416_v59 = vld [vmem:[%s5550_s1 + $0x40] sm:$0xf]  ;;  %v3428_v60 = vld [vmem:[%s5550_s1 + $0x4c] sm:$0xf0]  ;;  %v2817_v62 = vor.u32 %v3528_v55, %v2816_v54  ;;  %835 = vmatpush.bf16.msra.mxu1 %v2561_v57  ;;  %v3442_v44 = vld [vmem:[%s5550_s1 + $0xc4] sm:$0xf]  ;;  %v4034_v56 = vpack.c.bf16 %v35_v43, %v35_v43 }
  0x16   :  { %v2544_v61 = vld [vmem:[%s5550_s1 + $0x140] sm:$0xf]  ;;  %v3460_v63 = vld [vmem:[%s5550_s1 + $0x14c] sm:$0xf0]  ;;  %v2417_v4 = vor.u32 %v3428_v60, %v2416_v59  ;;  %848 = vmatpush.bf16.msra.mxu2 %v2689_v58  ;;  %v2482_v47 = vld [vmem:[%s5550_s1 + $0xd0] sm:$0xf0] }
  0x17   :  { %v2672_v0 = vld [vmem:[%s5550_s1 + $0x240] sm:$0xf]  ;;  %v3492_v1 = vld [vmem:[%s5550_s1 + $0x24c] sm:$0xf0]  ;;  %v2545_v5 = vor.u32 %v3460_v63, %v2544_v61  ;;  %861 = vmatpush.bf16.msra.mxu3 %v2817_v62  ;;  %v3474_v48 = vld [vmem:[%s5550_s1 + $0x1c4] sm:$0xf]  ;;  %v2485_v59 = vor.u32 %v3442_v44, %v2482_v47 }
  0x18   :  { %v2800_v2 = vld [vmem:[%s5550_s1 + $0x340] sm:$0xf]  ;;  %v3524_v3 = vld [vmem:[%s5550_s1 + $0x34c] sm:$0xf0]  ;;  %v2673_v6 = vor.u32 %v3492_v1, %v2672_v0  ;;  %823 = vmatpush.bf16.msra.mxu0 %v2417_v4  ;;  %v33_v49 = vld [vmem:[%s5551_s0 + $0x8] sm:$0xff] }
  0x19   :  { %v2400_v7 = vld [vmem:[%s5550_s1 + $0x20] sm:$0xf]  ;;  %v3424_v8 = vld [vmem:[%s5550_s1 + $0x2c] sm:$0xf0]  ;;  %v2801_v10 = vor.u32 %v3524_v3, %v2800_v2  ;;  %836 = vmatpush.bf16.msra.mxu1 %v2545_v5  ;;  %v2610_v52 = vld [vmem:[%s5550_s1 + $0x1d0] sm:$0xf0]  ;;  %v4042_v60 = vpack.c.bf16 %v33_v49, %v33_v49 }
  0x1a   :  { %v2528_v9 = vld [vmem:[%s5550_s1 + $0x120] sm:$0xf]  ;;  %v3456_v11 = vld [vmem:[%s5550_s1 + $0x12c] sm:$0xf0]  ;;  %v2401_v16 = vor.u32 %v3424_v8, %v2400_v7  ;;  %849 = vmatpush.bf16.msra.mxu2 %v2673_v6  ;;  %v3506_v53 = vld [vmem:[%s5550_s1 + $0x2c4] sm:$0xf]  ;;  %v2613_v61 = vor.u32 %v3474_v48, %v2610_v52 }
  0x1b   :  { %v2656_v12 = vld [vmem:[%s5550_s1 + $0x220] sm:$0xf]  ;;  %v3488_v13 = vld [vmem:[%s5550_s1 + $0x22c] sm:$0xf0]  ;;  %v2529_v19 = vor.u32 %v3456_v11, %v2528_v9  ;;  %862 = vmatpush.bf16.msra.mxu3 %v2801_v10  ;;  %v2738_v54 = vld [vmem:[%s5550_s1 + $0x2d0] sm:$0xf0] }
  0x1c   :  { %v2784_v14 = vld [vmem:[%s5550_s1 + $0x320] sm:$0xf]  ;;  %v3520_v15 = vld [vmem:[%s5550_s1 + $0x32c] sm:$0xf0]  ;;  %v2657_v20 = vor.u32 %v3488_v13, %v2656_v12  ;;  %824 = vmatpush.bf16.msra.mxu0 %v2401_v16  ;;  %v3538_v57 = vld [vmem:[%s5550_s1 + $0x3c4] sm:$0xf]  ;;  %v2741_v62 = vor.u32 %v3506_v53, %v2738_v54 }
  0x1d   :  { %v2384_v17 = vld [vmem:[%s5550_s1] sm:$0xf]  ;;  %v3420_v18 = vld [vmem:[%s5550_s1 + $0xc] sm:$0xf0]  ;;  %v2785_v24 = vor.u32 %v3520_v15, %v2784_v14  ;;  %837 = vmatpush.bf16.msra.mxu1 %v2529_v19  ;;  %v2866_v58 = vld [vmem:[%s5550_s1 + $0x3d0] sm:$0xf0] }
  0x1e   :  { %v2512_v21 = vld [vmem:[%s5550_s1 + $0x100] sm:$0xf]  ;;  %v3452_v22 = vld [vmem:[%s5550_s1 + $0x10c] sm:$0xf0]  ;;  %v2385_v31 = vor.u32 %v3420_v18, %v2384_v17  ;;  %850 = vmatpush.bf16.msra.mxu2 %v2657_v20  ;;  %v3438_v63 = vld [vmem:[%s5550_s1 + $0xa4] sm:$0xf]  ;;  %v2869_v2 = vor.u32 %v3538_v57, %v2866_v58 }
  0x1f   :  { %v2640_v23 = vld [vmem:[%s5550_s1 + $0x200] sm:$0xf]  ;;  %v3484_v25 = vld [vmem:[%s5550_s1 + $0x20c] sm:$0xf0]  ;;  %v2513_v35 = vor.u32 %v3452_v22, %v2512_v21  ;;  %863 = vmatpush.bf16.msra.mxu3 %v2785_v24  ;;  %v2466_v0 = vld [vmem:[%s5550_s1 + $0xb0] sm:$0xf0] }
  0x20   :  { %v2768_v26 = vld [vmem:[%s5550_s1 + $0x300] sm:$0xf]  ;;  %v3516_v27 = vld [vmem:[%s5550_s1 + $0x30c] sm:$0xf0]  ;;  %v2641_v36 = vor.u32 %v3484_v25, %v2640_v23  ;;  %825 = vmatpush.bf16.msra.mxu0 %v2385_v31  ;;  %v3470_v1 = vld [vmem:[%s5550_s1 + $0x1a4] sm:$0xf]  ;;  %v2469_v8 = vor.u32 %v3438_v63, %v2466_v0 }
  0x21   :  { %v34_v39 = vld [vmem:[%s5551_s0 + $0x10] sm:$0xff]  ;;  %v2769_v40 = vor.u32 %v3516_v27, %v2768_v26  ;;  %v32_v42 = vld [vmem:[%s5551_s0] sm:$0xff]  ;;  %838 = vmatpush.bf16.msra.mxu1 %v2513_v35 }
  0x22   :  { %v4021_v51 = vpack.c.bf16 %v34_v39, %v34_v39  ;;  %851 = vmatpush.bf16.msra.mxu2 %v2641_v36  ;;  %v4032_v55 = vpack.c.bf16 %v32_v42, %v32_v42  ;;  %v2594_v3 = vld [vmem:[%s5550_s1 + $0x1b0] sm:$0xf0]  ;;  %v3502_v4 = vld [vmem:[%s5550_s1 + $0x2a4] sm:$0xf] }
  0x23   :  { %864 = vmatpush.bf16.msra.mxu3 %v2769_v40  ;;  %v2722_v5 = vld [vmem:[%s5550_s1 + $0x2b0] sm:$0xf0]  ;;  %v3534_v6 = vld [vmem:[%s5550_s1 + $0x3a4] sm:$0xf]  ;;  %v2597_v9 = vor.u32 %v3470_v1, %v2594_v3 }
  0x24   :  { %870 = vmatpush.bf16.msrb.mxu0 %v2501_v41  ;;  %v2850_v7 = vld [vmem:[%s5550_s1 + $0x3b0] sm:$0xf0]  ;;  %839 = vmatmul.bf16.vlgmr.msra.gmra.mxu1 %v4042_v60  ;;  %v2725_v10 = vor.u32 %v3502_v4, %v2722_v5  ;;  %v3434_v11 = vld [vmem:[%s5550_s1 + $0x84] sm:$0xf] }
  0x25   :  { %883 = vmatpush.bf16.msrb.mxu1 %v2629_v45  ;;  %852 = vmatmul.bf16.vlgmr.msra.gmra.mxu2 %v4021_v51  ;;  %v2450_v12 = vld [vmem:[%s5550_s1 + $0x90] sm:$0xf0]  ;;  %v3466_v13 = vld [vmem:[%s5550_s1 + $0x184] sm:$0xf]  ;;  %v2853_v14 = vor.u32 %v3534_v6, %v2850_v7 }
  0x26   :  { %896 = vmatpush.bf16.msrb.mxu2 %v2757_v46  ;;  %826 = vmatmul.bf16.vlgmr.msra.gmra.mxu0 %v4032_v55  ;;  %v2578_v15 = vld [vmem:[%s5550_s1 + $0x190] sm:$0xf0]  ;;  %v3498_v16 = vld [vmem:[%s5550_s1 + $0x284] sm:$0xf]  ;;  %v2453_v20 = vor.u32 %v3434_v11, %v2450_v12  ;;  %v3481_v12 = vld [vmem:[%s5550_s1 + $0x1f4] sm:$0xf0] }
  0x27   :  { %909 = vmatpush.bf16.msrb.mxu3 %v2885_v50  ;;  %v2706_v17 = vld [vmem:[%s5550_s1 + $0x290] sm:$0xf0]  ;;  %v3530_v18 = vld [vmem:[%s5550_s1 + $0x384] sm:$0xf]  ;;  %v2581_v21 = vor.u32 %v3466_v13, %v2578_v15  ;;  %v2760_v13 = vld [vmem:[%s5550_s1 + $0x2e8] sm:$0xf] }
  0x28   :  { %865 = vmatmul.bf16.vlgmr.msra.gmra.mxu3 %v4034_v56  ;;  %871 = vmatpush.bf16.msrb.mxu0 %v2485_v59  ;;  %v2834_v19 = vld [vmem:[%s5550_s1 + $0x390] sm:$0xf0]  ;;  %v2709_v22 = vor.u32 %v3498_v16, %v2706_v17  ;;  %v3430_v23 = vld [vmem:[%s5550_s1 + $0x64] sm:$0xf]  ;;  %v2888_v17 = vld [vmem:[%s5550_s1 + $0x3e8] sm:$0xf] }
  0x29   :  { %884 = vmatpush.bf16.msrb.mxu1 %v2613_v61  ;;  %v2434_v24 = vld [vmem:[%s5550_s1 + $0x70] sm:$0xf0]  ;;  %v3462_v25 = vld [vmem:[%s5550_s1 + $0x164] sm:$0xf]  ;;  %v2837_v26 = vor.u32 %v3530_v18, %v2834_v19  ;;  %v3545_v18 = vld [vmem:[%s5550_s1 + $0x3f4] sm:$0xf0] }
  0x2a   :  { %897 = vmatpush.bf16.msrb.mxu2 %v2741_v62  ;;  %v2562_v27 = vld [vmem:[%s5550_s1 + $0x170] sm:$0xf0]  ;;  %v3494_v28 = vld [vmem:[%s5550_s1 + $0x264] sm:$0xf]  ;;  %v2437_v32 = vor.u32 %v3430_v23, %v2434_v24  ;;  %v2488_v23 = vld [vmem:[%s5550_s1 + $0xc8] sm:$0xf] }
  0x2b   :  { %910 = vmatpush.bf16.msrb.mxu3 %v2869_v2  ;;  %v2690_v29 = vld [vmem:[%s5550_s1 + $0x270] sm:$0xf0]  ;;  %v3526_v30 = vld [vmem:[%s5550_s1 + $0x364] sm:$0xf]  ;;  %v2565_v33 = vor.u32 %v3462_v25, %v2562_v27  ;;  %v3445_v24 = vld [vmem:[%s5550_s1 + $0xd4] sm:$0xf0] }
  0x2c   :  { %872 = vmatpush.bf16.msrb.mxu0 %v2469_v8  ;;  %v2818_v31 = vld [vmem:[%s5550_s1 + $0x370] sm:$0xf0]  ;;  %v2693_v34 = vor.u32 %v3494_v28, %v2690_v29  ;;  %v3426_v35 = vld [vmem:[%s5550_s1 + $0x44] sm:$0xf]  ;;  %v2504_v8 = vld [vmem:[%s5550_s1 + $0xe8] sm:$0xf] }
  0x2d   :  { %885 = vmatpush.bf16.msrb.mxu1 %v2597_v9  ;;  %v2418_v36 = vld [vmem:[%s5550_s1 + $0x50] sm:$0xf0]  ;;  %v3458_v37 = vld [vmem:[%s5550_s1 + $0x144] sm:$0xf]  ;;  %v2821_v38 = vor.u32 %v3526_v30, %v2818_v31  ;;  %v3449_v9 = vld [vmem:[%s5550_s1 + $0xf4] sm:$0xf0] }
  0x2e   :  { %898 = vmatpush.bf16.msrb.mxu2 %v2725_v10  ;;  %v2546_v39 = vld [vmem:[%s5550_s1 + $0x150] sm:$0xf0]  ;;  %v3490_v40 = vld [vmem:[%s5550_s1 + $0x244] sm:$0xf]  ;;  %v2421_v44 = vor.u32 %v3426_v35, %v2418_v36  ;;  %v2632_v10 = vld [vmem:[%s5550_s1 + $0x1e8] sm:$0xf] }
  0x2f   :  { %911 = vmatpush.bf16.msrb.mxu3 %v2853_v14  ;;  %v2674_v41 = vld [vmem:[%s5550_s1 + $0x250] sm:$0xf0]  ;;  %v3522_v42 = vld [vmem:[%s5550_s1 + $0x344] sm:$0xf]  ;;  %v2549_v45 = vor.u32 %v3458_v37, %v2546_v39  ;;  %v3513_v14 = vld [vmem:[%s5550_s1 + $0x2f4] sm:$0xf0] }
  0x30   :  { %873 = vmatpush.bf16.msrb.mxu0 %v2453_v20  ;;  %v2802_v43 = vld [vmem:[%s5550_s1 + $0x350] sm:$0xf0]  ;;  %v2677_v46 = vor.u32 %v3490_v40, %v2674_v41  ;;  %v3422_v47 = vld [vmem:[%s5550_s1 + $0x24] sm:$0xf]  ;;  %v2505_v20 = vor.u32 %v3449_v9, %v2504_v8  ;;  %v2616_v25 = vld [vmem:[%s5550_s1 + $0x1c8] sm:$0xf] }
  0x31   :  { %886 = vmatpush.bf16.msrb.mxu1 %v2581_v21  ;;  %v2402_v48 = vld [vmem:[%s5550_s1 + $0x30] sm:$0xf0]  ;;  %v3454_v49 = vld [vmem:[%s5550_s1 + $0x124] sm:$0xf]  ;;  %v2805_v50 = vor.u32 %v3522_v42, %v2802_v43  ;;  %v2633_v21 = vor.u32 %v3481_v12, %v2632_v10  ;;  %v3477_v27 = vld [vmem:[%s5550_s1 + $0x1d4] sm:$0xf0] }
  0x32   :  { %899 = vmatpush.bf16.msrb.mxu2 %v2709_v22  ;;  %v2530_v52 = vld [vmem:[%s5550_s1 + $0x130] sm:$0xf0]  ;;  %v3486_v53 = vld [vmem:[%s5550_s1 + $0x224] sm:$0xf]  ;;  %v2405_v59 = vor.u32 %v3422_v47, %v2402_v48  ;;  %v2761_v22 = vor.u32 %v3513_v14, %v2760_v13  ;;  %v2744_v28 = vld [vmem:[%s5550_s1 + $0x2c8] sm:$0xf] }
  0x33   :  { %912 = vmatpush.bf16.msrb.mxu3 %v2837_v26  ;;  %v2658_v54 = vld [vmem:[%s5550_s1 + $0x230] sm:$0xf0]  ;;  %v3518_v57 = vld [vmem:[%s5550_s1 + $0x324] sm:$0xf]  ;;  %v2533_v63 = vor.u32 %v3454_v49, %v2530_v52  ;;  %v2889_v26 = vor.u32 %v3545_v18, %v2888_v17  ;;  %v3509_v29 = vld [vmem:[%s5550_s1 + $0x2d4] sm:$0xf0] }
  0x34   :  { %874 = vmatpush.bf16.msrb.mxu0 %v2437_v32  ;;  %v2786_v58 = vld [vmem:[%s5550_s1 + $0x330] sm:$0xf0]  ;;  %v3418_v61 = vld [vmem:[%s5550_s1 + $0x4] sm:$0xf]  ;;  %v2661_v0 = vor.u32 %v3486_v53, %v2658_v54  ;;  %v2872_v30 = vld [vmem:[%s5550_s1 + $0x3c8] sm:$0xf]  ;;  %v2489_v32 = vor.u32 %v3445_v24, %v2488_v23 }
  0x35   :  { %887 = vmatpush.bf16.msrb.mxu1 %v2565_v33  ;;  %v2386_v62 = vld [vmem:[%s5550_s1 + $0x10] sm:$0xf0]  ;;  %v3450_v1 = vld [vmem:[%s5550_s1 + $0x104] sm:$0xf]  ;;  %v2789_v4 = vor.u32 %v3518_v57, %v2786_v58  ;;  %v3541_v31 = vld [vmem:[%s5550_s1 + $0x3d4] sm:$0xf0]  ;;  %v2617_v33 = vor.u32 %v3477_v27, %v2616_v25 }
  0x36   :  { %900 = vmatpush.bf16.msrb.mxu2 %v2693_v34  ;;  %v2514_v2 = vld [vmem:[%s5550_s1 + $0x110] sm:$0xf0]  ;;  %v3482_v3 = vld [vmem:[%s5550_s1 + $0x204] sm:$0xf]  ;;  %v2389_v11 = vor.u32 %v3418_v61, %v2386_v62  ;;  %v2745_v34 = vor.u32 %v3509_v29, %v2744_v28  ;;  %v2472_v35 = vld [vmem:[%s5550_s1 + $0xa8] sm:$0xf] }
  0x37   :  { %913 = vmatpush.bf16.msrb.mxu3 %v2821_v38  ;;  %v2642_v5 = vld [vmem:[%s5550_s1 + $0x210] sm:$0xf0]  ;;  %v3514_v6 = vld [vmem:[%s5550_s1 + $0x304] sm:$0xf]  ;;  %v2517_v15 = vor.u32 %v3450_v1, %v2514_v2  ;;  %v3441_v36 = vld [vmem:[%s5550_s1 + $0xb4] sm:$0xf0]  ;;  %v2873_v38 = vor.u32 %v3541_v31, %v2872_v30 }
  0x38   :  { %875 = vmatpush.bf16.msrb.mxu0 %v2421_v44  ;;  %v2770_v7 = vld [vmem:[%s5550_s1 + $0x310] sm:$0xf0]  ;;  %v2645_v16 = vor.u32 %v3482_v3, %v2642_v5  ;;  %v2600_v37 = vld [vmem:[%s5550_s1 + $0x1a8] sm:$0xf]  ;;  %v3473_v39 = vld [vmem:[%s5550_s1 + $0x1b4] sm:$0xf0]  ;;  %v2473_v44 = vor.u32 %v3441_v36, %v2472_v35 }
  0x39   :  { %888 = vmatpush.bf16.msrb.mxu1 %v2549_v45  ;;  %v2773_v19 = vor.u32 %v3514_v6, %v2770_v7  ;;  %v2728_v40 = vld [vmem:[%s5550_s1 + $0x2a8] sm:$0xf]  ;;  %v3505_v41 = vld [vmem:[%s5550_s1 + $0x2b4] sm:$0xf0]  ;;  %v2601_v45 = vor.u32 %v3473_v39, %v2600_v37 }
  0x3a   :  { %901 = vmatpush.bf16.msrb.mxu2 %v2677_v46  ;;  %v2856_v42 = vld [vmem:[%s5550_s1 + $0x3a8] sm:$0xf]  ;;  %v3537_v43 = vld [vmem:[%s5550_s1 + $0x3b4] sm:$0xf0]  ;;  %v2729_v46 = vor.u32 %v3505_v41, %v2728_v40 }
  0x3b   :  { %914 = vmatpush.bf16.msrb.mxu3 %v2805_v50  ;;  %v2456_v47 = vld [vmem:[%s5550_s1 + $0x88] sm:$0xf]  ;;  %v3437_v48 = vld [vmem:[%s5550_s1 + $0x94] sm:$0xf0]  ;;  %v2857_v50 = vor.u32 %v3537_v43, %v2856_v42 }
  0x3c   :  { %876 = vmatpush.bf16.msrb.mxu0 %v2405_v59  ;;  %v2584_v49 = vld [vmem:[%s5550_s1 + $0x188] sm:$0xf]  ;;  %v3469_v52 = vld [vmem:[%s5550_s1 + $0x194] sm:$0xf0]  ;;  %v2457_v59 = vor.u32 %v3437_v48, %v2456_v47  ;;  %v2634_v48 = vld [vmem:[%s5550_s1 + $0x1f8] sm:$0xf0] }
  0x3d   :  { %889 = vmatpush.bf16.msrb.mxu1 %v2533_v63  ;;  %v2712_v53 = vld [vmem:[%s5550_s1 + $0x288] sm:$0xf]  ;;  %v3501_v54 = vld [vmem:[%s5550_s1 + $0x294] sm:$0xf0]  ;;  %v2585_v61 = vor.u32 %v3469_v52, %v2584_v49  ;;  %v3511_v49 = vld [vmem:[%s5550_s1 + $0x2ec] sm:$0xf] }
  0x3e   :  { %902 = vmatpush.bf16.msrb.mxu2 %v2661_v0  ;;  %v2840_v57 = vld [vmem:[%s5550_s1 + $0x388] sm:$0xf]  ;;  %v3533_v58 = vld [vmem:[%s5550_s1 + $0x394] sm:$0xf0]  ;;  %v2713_v62 = vor.u32 %v3501_v54, %v2712_v53  ;;  %v3543_v54 = vld [vmem:[%s5550_s1 + $0x3ec] sm:$0xf] }
  0x3f   :  { %915 = vmatpush.bf16.msrb.mxu3 %v2789_v4  ;;  %v2440_v63 = vld [vmem:[%s5550_s1 + $0x68] sm:$0xf]  ;;  %v3433_v0 = vld [vmem:[%s5550_s1 + $0x74] sm:$0xf0]  ;;  %v2841_v2 = vor.u32 %v3533_v58, %v2840_v57  ;;  %v2890_v57 = vld [vmem:[%s5550_s1 + $0x3f8] sm:$0xf0] }
  0x40   :  { %877 = vmatpush.bf16.msrb.mxu0 %v2389_v11  ;;  %v2568_v1 = vld [vmem:[%s5550_s1 + $0x168] sm:$0xf]  ;;  %v3465_v3 = vld [vmem:[%s5550_s1 + $0x174] sm:$0xf0]  ;;  %v2441_v8 = vor.u32 %v3433_v0, %v2440_v63  ;;  %v3443_v63 = vld [vmem:[%s5550_s1 + $0xcc] sm:$0xf] }
  0x41   :  { %890 = vmatpush.bf16.msrb.mxu1 %v2517_v15  ;;  %v2696_v4 = vld [vmem:[%s5550_s1 + $0x268] sm:$0xf]  ;;  %v3497_v5 = vld [vmem:[%s5550_s1 + $0x274] sm:$0xf0]  ;;  %v2569_v9 = vor.u32 %v3465_v3, %v2568_v1  ;;  %v2490_v0 = vld [vmem:[%s5550_s1 + $0xd8] sm:$0xf0] }
  0x42   :  { %903 = vmatpush.bf16.msrb.mxu2 %v2645_v16  ;;  %v2824_v6 = vld [vmem:[%s5550_s1 + $0x368] sm:$0xf]  ;;  %v3529_v7 = vld [vmem:[%s5550_s1 + $0x374] sm:$0xf0]  ;;  %v2697_v10 = vor.u32 %v3497_v5, %v2696_v4  ;;  %v3475_v1 = vld [vmem:[%s5550_s1 + $0x1cc] sm:$0xf] }
  0x43   :  { %916 = vmatpush.bf16.msrb.mxu3 %v2773_v19  ;;  %878 = vmatmul.bf16.vlgmr.msrb.gmra.mxu0 %v4032_v55  ;;  %v2424_v11 = vld [vmem:[%s5550_s1 + $0x48] sm:$0xf]  ;;  %v3429_v12 = vld [vmem:[%s5550_s1 + $0x54] sm:$0xf0]  ;;  %v2825_v14 = vor.u32 %v3529_v7, %v2824_v6  ;;  %v2618_v3 = vld [vmem:[%s5550_s1 + $0x1d8] sm:$0xf0] }
  0x44   :  { %922 = vmatpush.bf16.msra.mxu0 %v2505_v20  ;;  %891 = vmatmul.bf16.vlgmr.msrb.gmra.mxu1 %v4042_v60  ;;  %v2552_v13 = vld [vmem:[%s5550_s1 + $0x148] sm:$0xf]  ;;  %v3461_v15 = vld [vmem:[%s5550_s1 + $0x154] sm:$0xf0]  ;;  %v2425_v20 = vor.u32 %v3429_v12, %v2424_v11  ;;  %v3507_v4 = vld [vmem:[%s5550_s1 + $0x2cc] sm:$0xf] }
  0x45   :  { %935 = vmatpush.bf16.msra.mxu1 %v2633_v21  ;;  %904 = vmatmul.bf16.vlgmr.msrb.gmra.mxu2 %v4021_v51  ;;  %v2680_v16 = vld [vmem:[%s5550_s1 + $0x248] sm:$0xf]  ;;  %v3493_v17 = vld [vmem:[%s5550_s1 + $0x254] sm:$0xf0]  ;;  %v2553_v21 = vor.u32 %v3461_v15, %v2552_v13  ;;  %v2746_v5 = vld [vmem:[%s5550_s1 + $0x2d8] sm:$0xf0] }
  0x46   :  { %948 = vmatpush.bf16.msra.mxu2 %v2761_v22  ;;  %917 = vmatmul.bf16.vlgmr.msrb.gmra.mxu3 %v4034_v56  ;;  %v2808_v18 = vld [vmem:[%s5550_s1 + $0x348] sm:$0xf]  ;;  %v3525_v19 = vld [vmem:[%s5550_s1 + $0x354] sm:$0xf0]  ;;  %v2681_v22 = vor.u32 %v3493_v17, %v2680_v16  ;;  %v3539_v6 = vld [vmem:[%s5550_s1 + $0x3cc] sm:$0xf] }
  0x47   :  { %961 = vmatpush.bf16.msra.mxu3 %v2889_v26  ;;  %v2408_v23 = vld [vmem:[%s5550_s1 + $0x28] sm:$0xf]  ;;  %v3425_v24 = vld [vmem:[%s5550_s1 + $0x34] sm:$0xf0]  ;;  %v2809_v26 = vor.u32 %v3525_v19, %v2808_v18  ;;  %v2874_v7 = vld [vmem:[%s5550_s1 + $0x3d8] sm:$0xf0] }
  0x48   :  { %923 = vmatpush.bf16.msra.mxu0 %v2489_v32  ;;  %v2536_v25 = vld [vmem:[%s5550_s1 + $0x128] sm:$0xf]  ;;  %v3457_v27 = vld [vmem:[%s5550_s1 + $0x134] sm:$0xf0]  ;;  %v2409_v32 = vor.u32 %v3425_v24, %v2408_v23  ;;  %v3439_v11 = vld [vmem:[%s5550_s1 + $0xac] sm:$0xf] }
  0x49   :  { %936 = vmatpush.bf16.msra.mxu1 %v2617_v33  ;;  %v2664_v28 = vld [vmem:[%s5550_s1 + $0x228] sm:$0xf]  ;;  %v3489_v29 = vld [vmem:[%s5550_s1 + $0x234] sm:$0xf0]  ;;  %v2537_v35 = vor.u32 %v3457_v27, %v2536_v25  ;;  %v2474_v12 = vld [vmem:[%s5550_s1 + $0xb8] sm:$0xf0] }
  0x4a   :  { %949 = vmatpush.bf16.msra.mxu2 %v2745_v34  ;;  %v2792_v30 = vld [vmem:[%s5550_s1 + $0x328] sm:$0xf]  ;;  %v3521_v31 = vld [vmem:[%s5550_s1 + $0x334] sm:$0xf0]  ;;  %v2665_v36 = vor.u32 %v3489_v29, %v2664_v28  ;;  %v3471_v13 = vld [vmem:[%s5550_s1 + $0x1ac] sm:$0xf] }
  0x4b   :  { %962 = vmatpush.bf16.msra.mxu3 %v2873_v38  ;;  %v2392_v33 = vld [vmem:[%s5550_s1 + $0x8] sm:$0xf]  ;;  %v3421_v34 = vld [vmem:[%s5550_s1 + $0x14] sm:$0xf0]  ;;  %v2793_v40 = vor.u32 %v3521_v31, %v2792_v30  ;;  %v2602_v15 = vld [vmem:[%s5550_s1 + $0x1b8] sm:$0xf0] }
  0x4c   :  { %924 = vmatpush.bf16.msra.mxu0 %v2473_v44  ;;  %v2520_v37 = vld [vmem:[%s5550_s1 + $0x108] sm:$0xf]  ;;  %v3453_v38 = vld [vmem:[%s5550_s1 + $0x114] sm:$0xf0]  ;;  %v3447_v44 = vld [vmem:[%s5550_s1 + $0xec] sm:$0xf]  ;;  %v2393_v47 = vor.u32 %v3421_v34, %v2392_v33 }
  0x4d   :  { %937 = vmatpush.bf16.msra.mxu1 %v2601_v45  ;;  %v2648_v39 = vld [vmem:[%s5550_s1 + $0x208] sm:$0xf]  ;;  %v3485_v41 = vld [vmem:[%s5550_s1 + $0x214] sm:$0xf0]  ;;  %v2506_v45 = vld [vmem:[%s5550_s1 + $0xf8] sm:$0xf0]  ;;  %v2521_v52 = vor.u32 %v3453_v38, %v2520_v37 }
  0x4e   :  { %950 = vmatpush.bf16.msra.mxu2 %v2729_v46  ;;  %v2776_v42 = vld [vmem:[%s5550_s1 + $0x308] sm:$0xf]  ;;  %v3517_v43 = vld [vmem:[%s5550_s1 + $0x314] sm:$0xf0]  ;;  %v3479_v46 = vld [vmem:[%s5550_s1 + $0x1ec] sm:$0xf]  ;;  %v2649_v53 = vor.u32 %v3485_v41, %v2648_v39 }
  0x4f   :  { %963 = vmatpush.bf16.msra.mxu3 %v2857_v50  ;;  %v2762_v50 = vld [vmem:[%s5550_s1 + $0x2f8] sm:$0xf0]  ;;  %v2777_v58 = vor.u32 %v3517_v43, %v2776_v42  ;;  %v3503_v16 = vld [vmem:[%s5550_s1 + $0x2ac] sm:$0xf] }
  0x50   :  { %925 = vmatpush.bf16.msra.mxu0 %v2457_v59  ;;  %v2509_v59 = vor.u32 %v3447_v44, %v2506_v45  ;;  %v2730_v17 = vld [vmem:[%s5550_s1 + $0x2b8] sm:$0xf0]  ;;  %v3535_v18 = vld [vmem:[%s5550_s1 + $0x3ac] sm:$0xf] }
  0x51   :  { %938 = vmatpush.bf16.msra.mxu1 %v2585_v61  ;;  %v2637_v61 = vor.u32 %v3479_v46, %v2634_v48  ;;  %v2858_v19 = vld [vmem:[%s5550_s1 + $0x3b8] sm:$0xf0]  ;;  %v3435_v23 = vld [vmem:[%s5550_s1 + $0x8c] sm:$0xf] }
  0x52   :  { %951 = vmatpush.bf16.msra.mxu2 %v2713_v62  ;;  %v2765_v62 = vor.u32 %v3511_v49, %v2762_v50  ;;  %v2458_v24 = vld [vmem:[%s5550_s1 + $0x98] sm:$0xf0]  ;;  %v3467_v25 = vld [vmem:[%s5550_s1 + $0x18c] sm:$0xf] }
  0x53   :  { %964 = vmatpush.bf16.msra.mxu3 %v2841_v2  ;;  %v2893_v2 = vor.u32 %v3543_v54, %v2890_v57  ;;  %v2586_v27 = vld [vmem:[%s5550_s1 + $0x198] sm:$0xf0]  ;;  %v3499_v28 = vld [vmem:[%s5550_s1 + $0x28c] sm:$0xf] }
  0x54   :  { %926 = vmatpush.bf16.msra.mxu0 %v2441_v8  ;;  %v2493_v8 = vor.u32 %v3443_v63, %v2490_v0  ;;  %v2714_v29 = vld [vmem:[%s5550_s1 + $0x298] sm:$0xf0]  ;;  %v3531_v30 = vld [vmem:[%s5550_s1 + $0x38c] sm:$0xf]  ;;  %v2589_v33 = vor.u32 %v3467_v25, %v2586_v27  ;;  %v2996_v27 = vld [vmem:[%s5552_s3 + $0xc0] sm:$0xf] }
  0x55   :  { %939 = vmatpush.bf16.msra.mxu1 %v2569_v9  ;;  %v2621_v9 = vor.u32 %v3475_v1, %v2618_v3  ;;  %v2842_v31 = vld [vmem:[%s5550_s1 + $0x398] sm:$0xf0]  ;;  %v2717_v34 = vor.u32 %v3499_v28, %v2714_v29  ;;  %v3463_v37 = vld [vmem:[%s5550_s1 + $0x16c] sm:$0xf]  ;;  %v3572_v28 = vld [vmem:[%s5552_s3 + $0xcc] sm:$0xf0] }
  0x56   :  { %952 = vmatpush.bf16.msra.mxu2 %v2697_v10  ;;  %v2749_v10 = vor.u32 %v3507_v4, %v2746_v5  ;;  %v2845_v38 = vor.u32 %v3531_v30, %v2842_v31  ;;  %v2570_v39 = vld [vmem:[%s5550_s1 + $0x178] sm:$0xf0]  ;;  %v3527_v42 = vld [vmem:[%s5550_s1 + $0x36c] sm:$0xf]  ;;  %v2997_v29 = vor.u32 %v3572_v28, %v2996_v27  ;;  %v2980_v30 = vld [vmem:[%s5552_s3 + $0xa0] sm:$0xf] }
  0x57   :  { %965 = vmatpush.bf16.msra.mxu3 %v2825_v14  ;;  %v2877_v14 = vor.u32 %v3539_v6, %v2874_v7  ;;  %v2698_v41 = vld [vmem:[%s5550_s1 + $0x278] sm:$0xf0]  ;;  %v2573_v45 = vor.u32 %v3463_v37, %v2570_v39  ;;  %v3459_v49 = vld [vmem:[%s5550_s1 + $0x14c] sm:$0xf]  ;;  %v3568_v31 = vld [vmem:[%s5552_s3 + $0xac] sm:$0xf0] }
  0x58   :  { %927 = vmatpush.bf16.msra.mxu0 %v2425_v20  ;;  %v2477_v20 = vor.u32 %v3439_v11, %v2474_v12  ;;  %v2826_v43 = vld [vmem:[%s5550_s1 + $0x378] sm:$0xf0]  ;;  %v3523_v57 = vld [vmem:[%s5550_s1 + $0x34c] sm:$0xf]  ;;  %v3552_v39 = vld [vmem:[%s5552_s3 + $0x2c] sm:$0xf0] }
  0x59   :  { %940 = vmatpush.bf16.msra.mxu1 %v2553_v21  ;;  %v2605_v21 = vor.u32 %v3471_v13, %v2602_v15  ;;  %v2426_v48 = vld [vmem:[%s5550_s1 + $0x58] sm:$0xf0]  ;;  %v2829_v50 = vor.u32 %v3527_v42, %v2826_v43  ;;  %v3423_v63 = vld [vmem:[%s5550_s1 + $0x2c] sm:$0xf]  ;;  %v3608_v42 = vld [vmem:[%s5552_s3 + $0x1ec] sm:$0xf0] }
  0x5a   :  { %953 = vmatpush.bf16.msra.mxu2 %v2681_v22  ;;  %v2733_v22 = vor.u32 %v3503_v16, %v2730_v17  ;;  %v2682_v54 = vld [vmem:[%s5550_s1 + $0x258] sm:$0xf0]  ;;  %v3455_v1 = vld [vmem:[%s5550_s1 + $0x12c] sm:$0xf]  ;;  %v2900_v43 = vld [vmem:[%s5552_s3] sm:$0xf] }
  0x5b   :  { %966 = vmatpush.bf16.msra.mxu3 %v2809_v26  ;;  %v2861_v26 = vor.u32 %v3535_v18, %v2858_v19  ;;  %v2410_v0 = vld [vmem:[%s5550_s1 + $0x38] sm:$0xf0]  ;;  %v3487_v4 = vld [vmem:[%s5550_s1 + $0x22c] sm:$0xf]  ;;  %v3044_v28 = vld [vmem:[%s5552_s3 + $0x120] sm:$0xf] }
  0x5c   :  { %928 = vmatpush.bf16.msra.mxu0 %v2409_v32  ;;  %v2461_v32 = vor.u32 %v3435_v23, %v2458_v24  ;;  %v2538_v3 = vld [vmem:[%s5550_s1 + $0x138] sm:$0xf0]  ;;  %v3519_v6 = vld [vmem:[%s5550_s1 + $0x32c] sm:$0xf] }
  0x5d   :  { %941 = vmatpush.bf16.msra.mxu1 %v2537_v35  ;;  %v3431_v35 = vld [vmem:[%s5550_s1 + $0x6c] sm:$0xf]  ;;  %v2666_v5 = vld [vmem:[%s5550_s1 + $0x238] sm:$0xf0] }
  0x5e   :  { %954 = vmatpush.bf16.msra.mxu2 %v2665_v36  ;;  %v2442_v36 = vld [vmem:[%s5550_s1 + $0x78] sm:$0xf0]  ;;  %v2669_v11 = vor.u32 %v3487_v4, %v2666_v5  ;;  %v3451_v13 = vld [vmem:[%s5550_s1 + $0x10c] sm:$0xf] }
  0x5f   :  { %967 = vmatpush.bf16.msra.mxu3 %v2793_v40  ;;  %v3495_v40 = vld [vmem:[%s5550_s1 + $0x26c] sm:$0xf]  ;;  %v2445_v44 = vor.u32 %v3431_v35, %v2442_v36  ;;  %v2794_v7 = vld [vmem:[%s5550_s1 + $0x338] sm:$0xf0]  ;;  %v2932_v35 = vld [vmem:[%s5552_s3 + $0x40] sm:$0xf] }
  0x60   :  { %929 = vmatpush.bf16.msra.mxu0 %v2393_v47  ;;  %v2701_v46 = vor.u32 %v3495_v40, %v2698_v41  ;;  %v3427_v47 = vld [vmem:[%s5550_s1 + $0x4c] sm:$0xf]  ;;  %v2394_v12 = vld [vmem:[%s5550_s1 + $0x18] sm:$0xf0]  ;;  %v2797_v15 = vor.u32 %v3519_v6, %v2794_v7  ;;  %v3556_v36 = vld [vmem:[%s5552_s3 + $0x4c] sm:$0xf0] }
  0x61   :  { %942 = vmatpush.bf16.msra.mxu1 %v2521_v52  ;;  %v2554_v52 = vld [vmem:[%s5550_s1 + $0x158] sm:$0xf0]  ;;  %v3483_v16 = vld [vmem:[%s5550_s1 + $0x20c] sm:$0xf]  ;;  %v2933_v37 = vor.u32 %v3556_v36, %v2932_v35  ;;  %v3140_v41 = vld [vmem:[%s5552_s3 + $0x1e0] sm:$0xf] }
  0x62   :  { %955 = vmatpush.bf16.msra.mxu2 %v2649_v53  ;;  %v3491_v53 = vld [vmem:[%s5550_s1 + $0x24c] sm:$0xf]  ;;  %v2650_v17 = vld [vmem:[%s5550_s1 + $0x218] sm:$0xf0]  ;;  %v3562_v6 = vld [vmem:[%s5552_s3 + $0x84] sm:$0xf] }
  0x63   :  { %968 = vmatpush.bf16.msra.mxu3 %v2777_v58  ;;  %930 = vmatmul.bf16.vlgmr.msra.gmra.mxu0 %v4032_v55  ;;  %v2810_v58 = vld [vmem:[%s5550_s1 + $0x358] sm:$0xf0]  ;;  %v3515_v18 = vld [vmem:[%s5550_s1 + $0x30c] sm:$0xf]  ;;  %v2653_v24 = vor.u32 %v3483_v16, %v2650_v17  ;;  %v2966_v7 = vld [vmem:[%s5552_s3 + $0x90] sm:$0xf0] }
  0x64   :  { %974 = vmatpush.bf16.msrb.mxu0 %v2509_v59  ;;  %943 = vmatmul.bf16.vlgmr.msra.gmra.mxu1 %v4042_v60  ;;  %v2429_v59 = vor.u32 %v3427_v47, %v2426_v48  ;;  %v2778_v19 = vld [vmem:[%s5550_s1 + $0x318] sm:$0xf0]  ;;  %v3014_v47 = vld [vmem:[%s5552_s3 + $0xf0] sm:$0xf0]  ;;  %v3580_v35 = vld [vmem:[%s5552_s3 + $0x10c] sm:$0xf0] }
  0x65   :  { %987 = vmatpush.bf16.msrb.mxu1 %v2637_v61  ;;  %956 = vmatmul.bf16.vlgmr.msra.gmra.mxu2 %v4021_v51  ;;  %v2557_v61 = vor.u32 %v3459_v49, %v2554_v52  ;;  %v2781_v25 = vor.u32 %v3515_v18, %v2778_v19  ;;  %v3124_v49 = vld [vmem:[%s5552_s3 + $0x1c0] sm:$0xf]  ;;  %v3588_v19 = vld [vmem:[%s5552_s3 + $0x14c] sm:$0xf0] }
  0x66   :  { %1000 = vmatpush.bf16.msrb.mxu2 %v2765_v62  ;;  %969 = vmatmul.bf16.vlgmr.msra.gmra.mxu3 %v4034_v56  ;;  %v2685_v62 = vor.u32 %v3491_v53, %v2682_v54  ;;  %v3570_v54 = vld [vmem:[%s5552_s3 + $0xc4] sm:$0xf]  ;;  %v3060_v18 = vld [vmem:[%s5552_s3 + $0x140] sm:$0xf] }
  0x67   :  { %1013 = vmatpush.bf16.msrb.mxu3 %v2893_v2  ;;  %v2813_v2 = vor.u32 %v3523_v57, %v2810_v58  ;;  %v2998_v57 = vld [vmem:[%s5552_s3 + $0xd0] sm:$0xf0]  ;;  %v3108_v58 = vld [vmem:[%s5552_s3 + $0x1a0] sm:$0xf] }
  0x68   :  { %975 = vmatpush.bf16.msrb.mxu0 %v2493_v8  ;;  %v2413_v8 = vor.u32 %v3423_v63, %v2410_v0  ;;  %v3566_v63 = vld [vmem:[%s5552_s3 + $0xa4] sm:$0xf]  ;;  %v2982_v0 = vld [vmem:[%s5552_s3 + $0xb0] sm:$0xf0] }
  0x69   :  { %988 = vmatpush.bf16.msrb.mxu1 %v2621_v9  ;;  %v3419_v9 = vld [vmem:[%s5550_s1 + $0xc] sm:$0xf]  ;;  %v2985_v4 = vor.u32 %v3566_v63, %v2982_v0  ;;  %v3598_v0 = vld [vmem:[%s5552_s3 + $0x1a4] sm:$0xf] }
  0x6a   :  { %1001 = vmatpush.bf16.msrb.mxu2 %v2749_v10  ;;  %v2541_v10 = vor.u32 %v3455_v1, %v2538_v3  ;;  %v4675_v1 = vld [vmem:[%s5553_s2] sm:$0xf]  ;;  %v3596_v3 = vld [vmem:[%s5552_s3 + $0x18c] sm:$0xf0] }
  0x6b   :  { %1014 = vmatpush.bf16.msrb.mxu3 %v2877_v14  ;;  %v2522_v14 = vld [vmem:[%s5550_s1 + $0x118] sm:$0xf0] }
  0x6c   :  { %976 = vmatpush.bf16.msrb.mxu0 %v2477_v20  ;;  %v3012_v20 = vld [vmem:[%s5552_s3 + $0xe0] sm:$0xf]  ;;  %v2525_v23 = vor.u32 %v3451_v13, %v2522_v14  ;;  %v3558_v14 = vld [vmem:[%s5552_s3 + $0x64] sm:$0xf] }
  0x6d   :  { %989 = vmatpush.bf16.msrb.mxu1 %v2605_v21  ;;  %v3576_v21 = vld [vmem:[%s5552_s3 + $0xec] sm:$0xf0] }
  0x6e   :  { %1002 = vmatpush.bf16.msrb.mxu2 %v2733_v22  ;;  %v2397_v22 = vor.u32 %v3419_v9, %v2394_v12  ;;  %v3076_v9 = vld [vmem:[%s5552_s3 + $0x160] sm:$0xf] }
  0x6f   :  { %1015 = vmatpush.bf16.msrb.mxu3 %v2861_v26  ;;  %v3013_v26 = vor.u32 %v3576_v21, %v3012_v20 }
  0x70   :  { %977 = vmatpush.bf16.msrb.mxu0 %v2461_v32  ;;  %v2981_v32 = vor.u32 %v3568_v31, %v2980_v30 }
  0x71   :  { %990 = vmatpush.bf16.msrb.mxu1 %v2589_v33  ;;  %v3564_v33 = vld [vmem:[%s5552_s3 + $0x8c] sm:$0xf0] }
  0x72   :  { %1003 = vmatpush.bf16.msrb.mxu2 %v2717_v34 }
  0x73   :  { %1016 = vmatpush.bf16.msrb.mxu3 %v2845_v38  ;;  %v2916_v38 = vld [vmem:[%s5552_s3 + $0x20] sm:$0xf] }
  0x74   :  { %978 = vmatpush.bf16.msrb.mxu0 %v2445_v44  ;;  %v2917_v40 = vor.u32 %v3552_v39, %v2916_v38  ;;  %v3548_v44 = vld [vmem:[%s5552_s3 + $0xc] sm:$0xf0]  ;;  %v3546_v38 = vld [vmem:[%s5552_s3 + $0x4] sm:$0xf]  ;;  %v2902_v39 = vld [vmem:[%s5552_s3 + $0x10] sm:$0xf0] }
  0x75   :  { %991 = vmatpush.bf16.msrb.mxu1 %v2573_v45  ;;  %v3141_v45 = vor.u32 %v3608_v42, %v3140_v41  ;;  %v2901_v48 = vor.u32 %v3548_v44, %v2900_v43  ;;  %v3640_v41 = vld [vmem:[%s5552_s3 + $0x2ec] sm:$0xf0]  ;;  %v3606_v42 = vld [vmem:[%s5552_s3 + $0x1e4] sm:$0xf]  ;;  %v3142_v43 = vld [vmem:[%s5552_s3 + $0x1f0] sm:$0xf0] }
  0x76   :  { %1004 = vmatpush.bf16.msrb.mxu2 %v2701_v46  ;;  %v3574_v46 = vld [vmem:[%s5552_s3 + $0xe4] sm:$0xf] }
  0x77   :  { %1017 = vmatpush.bf16.msrb.mxu3 %v2829_v50  ;;  %v3604_v50 = vld [vmem:[%s5552_s3 + $0x1cc] sm:$0xf0]  ;;  %v3017_v52 = vor.u32 %v3574_v46, %v3014_v47  ;;  %v3145_v46 = vor.u32 %v3606_v42, %v3142_v43  ;;  %v3046_v43 = vld [vmem:[%s5552_s3 + $0x130] sm:$0xf0] }
  0x78   :  { %979 = vmatpush.bf16.msrb.mxu0 %v2429_v59  ;;  %v3125_v53 = vor.u32 %v3604_v50, %v3124_v49  ;;  %v3600_v59 = vld [vmem:[%s5552_s3 + $0x1ac] sm:$0xf0]  ;;  %v3252_v49 = vld [vmem:[%s5552_s3 + $0x2c0] sm:$0xf] }
  0x79   :  { %992 = vmatpush.bf16.msrb.mxu1 %v2557_v61  ;;  %v3001_v61 = vor.u32 %v3570_v54, %v2998_v57  ;;  %v3636_v50 = vld [vmem:[%s5552_s3 + $0x2cc] sm:$0xf0]  ;;  %v3126_v54 = vld [vmem:[%s5552_s3 + $0x1d0] sm:$0xf0] }
  0x7a   :  { %1005 = vmatpush.bf16.msrb.mxu2 %v2685_v62  ;;  %v3109_v62 = vor.u32 %v3600_v59, %v3108_v58 }
  0x7b   :  { %1018 = vmatpush.bf16.msrb.mxu3 %v2813_v2  ;;  %v3092_v2 = vld [vmem:[%s5552_s3 + $0x180] sm:$0xf] }
  0x7c   :  { %980 = vmatpush.bf16.msrb.mxu0 %v2413_v8  ;;  %v3093_v5 = vor.u32 %v3596_v3, %v3092_v2  ;;  %v170_v8 = vperm.slane %v4675_v1, 0  ;;  %v3110_v2 = vld [vmem:[%s5552_s3 + $0x1b0] sm:$0xf0] }
  0x7d   :  { %993 = vmatpush.bf16.msrb.mxu1 %v2541_v10  ;;  %v3592_v10 = vld [vmem:[%s5552_s3 + $0x16c] sm:$0xf0]  ;;  %v3113_v3 = vor.u32 %v3598_v0, %v3110_v2  ;;  %v3396_v0 = vld [vmem:[%s5552_s3 + $0x3e0] sm:$0xf] }
  0x7e   :  { %1006 = vmatpush.bf16.msrb.mxu2 %v2669_v11  ;;  %v2969_v11 = vor.u32 %v3562_v6, %v2966_v7  ;;  %v3077_v12 = vor.u32 %v3592_v10, %v3076_v9  ;;  %v3594_v7 = vld [vmem:[%s5552_s3 + $0x184] sm:$0xf]  ;;  %v171_v10 = vperm.slane %v4675_v1, 1  ;;  %v3672_v2 = vld [vmem:[%s5552_s3 + $0x3ec] sm:$0xf0] }
  0x7f   :  { %1019 = vmatpush.bf16.msrb.mxu3 %v2797_v15  ;;  %v2950_v15 = vld [vmem:[%s5552_s3 + $0x70] sm:$0xf0] }
  0x80   :  { %981 = vmatpush.bf16.msrb.mxu0 %v2397_v22  ;;  %v2953_v21 = vor.u32 %v3558_v14, %v2950_v15  ;;  %v3061_v22 = vor.u32 %v3588_v19, %v3060_v18  ;;  %v3590_v14 = vld [vmem:[%s5552_s3 + $0x164] sm:$0xf] }
  0x81   :  { %994 = vmatpush.bf16.msrb.mxu1 %v2525_v23  ;;  %v3554_v23 = vld [vmem:[%s5552_s3 + $0x44] sm:$0xf] }
  0x82   :  { %1007 = vmatpush.bf16.msrb.mxu2 %v2653_v24  ;;  %v2934_v24 = vld [vmem:[%s5552_s3 + $0x50] sm:$0xf0] }
  0x83   :  { %1020 = vmatpush.bf16.msrb.mxu3 %v2781_v25  ;;  %982 = vmatmul.bf16.vlgmr.msrb.gmra.mxu0 %v4032_v55  ;;  %v2964_v55 = vld [vmem:[%s5552_s3 + $0x80] sm:$0xf]  ;;  %v2937_v30 = vor.u32 %v3554_v23, %v2934_v24 }
  0x84   :  { %1888 = vmatpush.bf16.msra.mxu0 %v3013_v26  ;;  %995 = vmatmul.bf16.vlgmr.msrb.gmra.mxu1 %v4042_v60  ;;  %v2965_v34 = vor.u32 %v3564_v33, %v2964_v55  ;;  %v2948_v60 = vld [vmem:[%s5552_s3 + $0x60] sm:$0xf]  ;;  %v3550_v33 = vld [vmem:[%s5552_s3 + $0x24] sm:$0xf] }
  0x85   :  { %1008 = vmatmul.bf16.vlgmr.msrb.gmra.mxu2 %v4021_v51  ;;  %v3560_v51 = vld [vmem:[%s5552_s3 + $0x6c] sm:$0xf0]  ;;  %1901 = vmatpush.bf16.msra.mxu1 %v3141_v45 }
  0x86   :  { %1021 = vmatmul.bf16.vlgmr.msrb.gmra.mxu3 %v4034_v56  ;;  %v2949_v56 = vor.u32 %v3560_v51, %v2948_v60 }
  0x88   :  { %1889 = vmatpush.bf16.msra.mxu0 %v2997_v29  ;;  %v3584_v29 = vld [vmem:[%s5552_s3 + $0x12c] sm:$0xf0] }
  0x89   :  { %1902 = vmatpush.bf16.msra.mxu1 %v3125_v53  ;;  %v3045_v31 = vor.u32 %v3584_v29, %v3044_v28  ;;  %v3253_v53 = vor.u32 %v3636_v50, %v3252_v49 }
  0x8c   :  { %1890 = vmatpush.bf16.msra.mxu0 %v2981_v32 }
  0x8d   :  { %1903 = vmatpush.bf16.msra.mxu1 %v3109_v62  ;;  %v3632_v62 = vld [vmem:[%s5552_s3 + $0x2ac] sm:$0xf0] }
  0x90   :  { %1891 = vmatpush.bf16.msra.mxu0 %v2965_v34  ;;  %v2918_v34 = vld [vmem:[%s5552_s3 + $0x30] sm:$0xf0] }
  0x91   :  { %1904 = vmatpush.bf16.msra.mxu1 %v3093_v5  ;;  %v2921_v36 = vor.u32 %v3550_v33, %v2918_v34  ;;  %v3628_v5 = vld [vmem:[%s5552_s3 + $0x28c] sm:$0xf0] }
  0x94   :  { %1892 = vmatpush.bf16.msra.mxu0 %v2949_v56  ;;  %v3028_v56 = vld [vmem:[%s5552_s3 + $0x100] sm:$0xf] }
  0x95   :  { %1905 = vmatpush.bf16.msra.mxu1 %v3077_v12  ;;  %v3204_v12 = vld [vmem:[%s5552_s3 + $0x260] sm:$0xf] }
  0x98   :  { %1893 = vmatpush.bf16.msra.mxu0 %v2933_v37  ;;  %v3029_v37 = vor.u32 %v3580_v35, %v3028_v56  ;;  %v3172_v56 = vld [vmem:[%s5552_s3 + $0x220] sm:$0xf]  ;;  %v3616_v35 = vld [vmem:[%s5552_s3 + $0x22c] sm:$0xf0] }
  0x99   :  { %1906 = vmatpush.bf16.msra.mxu1 %v3061_v22  ;;  %v3173_v42 = vor.u32 %v3616_v35, %v3172_v56 }
  0x9c   :  { %1894 = vmatpush.bf16.msra.mxu0 %v2917_v40  ;;  %v3268_v40 = vld [vmem:[%s5552_s3 + $0x2e0] sm:$0xf] }
  0x9d   :  { %1907 = vmatpush.bf16.msra.mxu1 %v3045_v31  ;;  %v3269_v45 = vor.u32 %v3640_v41, %v3268_v40  ;;  %v3020_v40 = vld [vmem:[%s5552_s3 + $0xe8] sm:$0xf]  ;;  %v3577_v41 = vld [vmem:[%s5552_s3 + $0xf4] sm:$0xf0] }
  0x9e   :  { %v3021_v50 = vor.u32 %v3577_v41, %v3020_v40  ;;  %v3561_v31 = vld [vmem:[%s5552_s3 + $0x74] sm:$0xf0]  ;;  %v3622_v40 = vld [vmem:[%s5552_s3 + $0x264] sm:$0xf] }
  0x9f   :  { %1914 = vmatpush.bf16.msra.mxu2 %v3269_v45 }
  0xa0   :  { %1895 = vmatpush.bf16.msra.mxu0 %v2901_v48  ;;  %v2905_v48 = vor.u32 %v3546_v38, %v2902_v39 }
  0xa1   :  { %v840_v17 = vpop.f32.mrf.mxu1  ;;  %1908 = vmatpush.bf16.msra.mxu1 %v3029_v37 }
  0xa3   :  { %v827_v13 = vpop.f32.mrf.mxu0  ;;  %1915 = vmatpush.bf16.msra.mxu2 %v3253_v53  ;;  %v3156_v53 = vld [vmem:[%s5552_s3 + $0x200] sm:$0xf] }
  0xa4   :  { %1940 = vmatpush.bf16.msrb.mxu0 %v3017_v52  ;;  %v828_v16 = vadd.f32 %v827_v13, %v170_v8  ;;  %v3602_v52 = vld [vmem:[%s5552_s3 + $0x1c4] sm:$0xf]  ;;  %v3094_v8 = vld [vmem:[%s5552_s3 + $0x190] sm:$0xf0]  ;;  %v3624_v13 = vld [vmem:[%s5552_s3 + $0x26c] sm:$0xf0] }
  0xa5   :  { %1953 = vmatpush.bf16.msrb.mxu1 %v3145_v46  ;;  %v3129_v57 = vor.u32 %v3602_v52, %v3126_v54  ;;  %v3097_v9 = vor.u32 %v3594_v7, %v3094_v8  ;;  %v3612_v54 = vld [vmem:[%s5552_s3 + $0x20c] sm:$0xf0]  ;;  %v2988_v7 = vld [vmem:[%s5552_s3 + $0xa8] sm:$0xf]  ;;  %v3569_v8 = vld [vmem:[%s5552_s3 + $0xb4] sm:$0xf0] }
  0xa6   :  { %v841_v20 = vadd.f32 %v840_v17, %v828_v16  ;;  %v3205_v16 = vor.u32 %v3624_v13, %v3204_v12  ;;  %v3078_v17 = vld [vmem:[%s5552_s3 + $0x170] sm:$0xf0]  ;;  %v3380_v12 = vld [vmem:[%s5552_s3 + $0x3c0] sm:$0xf]  ;;  %v3668_v13 = vld [vmem:[%s5552_s3 + $0x3cc] sm:$0xf0] }
  0xa7   :  { %v3081_v19 = vor.u32 %v3590_v14, %v3078_v17  ;;  %v3634_v14 = vld [vmem:[%s5552_s3 + $0x2c4] sm:$0xf] }
  0xa8   :  { %1941 = vmatpush.bf16.msrb.mxu0 %v3001_v61  ;;  %v853_v25 = vpop.f32.mrf.mxu2  ;;  %v3236_v61 = vld [vmem:[%s5552_s3 + $0x2a0] sm:$0xf] }
  0xa9   :  { %v854_v26 = vadd.f32 %v853_v25, %v841_v20  ;;  %v842_v60 = vpop.f32.mrf.mxu1  ;;  %1954 = vmatpush.bf16.msrb.mxu1 %v3129_v57  ;;  %v3237_v63 = vor.u32 %v3632_v62, %v3236_v61  ;;  %v3188_v25 = vld [vmem:[%s5552_s3 + $0x240] sm:$0xf]  ;;  %v3157_v61 = vor.u32 %v3612_v54, %v3156_v53  ;;  %v3030_v62 = vld [vmem:[%s5552_s3 + $0x110] sm:$0xf0]  ;;  %v3553_v53 = vld [vmem:[%s5552_s3 + $0x34] sm:$0xf0] }
  0xab   :  { %v866_v27 = vpop.f32.mrf.mxu3  ;;  %v829_v55 = vpop.f32.mrf.mxu0  ;;  %1916 = vmatpush.bf16.msra.mxu2 %v3237_v63 }
  0xac   :  { %1942 = vmatpush.bf16.msrb.mxu0 %v2985_v4  ;;  %v4720_v32 = vadd.f32 %v866_v27, %v854_v26  ;;  %v3220_v4 = vld [vmem:[%s5552_s3 + $0x280] sm:$0xf]  ;;  %v3620_v26 = vld [vmem:[%s5552_s3 + $0x24c] sm:$0xf0]  ;;  %v3586_v27 = vld [vmem:[%s5552_s3 + $0x144] sm:$0xf] }
  0xad   :  { %1955 = vmatpush.bf16.msrb.mxu1 %v3113_v3  ;;  %v3221_v6 = vor.u32 %v3628_v5, %v3220_v4  ;;  %v3189_v29 = vor.u32 %v3620_v26, %v3188_v25  ;;  %v3397_v3 = vor.u32 %v3672_v2, %v3396_v0  ;;  %v3638_v4 = vld [vmem:[%s5552_s3 + $0x2e4] sm:$0xf]  ;;  %v3270_v5 = vld [vmem:[%s5552_s3 + $0x2f0] sm:$0xf0] }
  0xae   :  { %v2894_v51 = vmul.f32 -1.442695, %v4720_v32  ;;  %v3618_v0 = vld [vmem:[%s5552_s3 + $0x244] sm:$0xf]  ;;  %v3190_v2 = vld [vmem:[%s5552_s3 + $0x250] sm:$0xf0] }
  0xaf   :  { %1917 = vmatpush.bf16.msra.mxu2 %v3221_v6  ;;  %1927 = vmatpush.bf16.msra.mxu3 %v3397_v3 }
  0xb0   :  { %1943 = vmatpush.bf16.msrb.mxu0 %v2969_v11  ;;  %3680 = vpow2.f32 %v2894_v51  ;;  %v855_v44 = vpop.f32.mrf.mxu2 }
  0xb1   :  { %1956 = vmatpush.bf16.msrb.mxu1 %v3097_v9 }
  0xb3   :  { %v868_v47 = vpop.f32.mrf.mxu3  ;;  %1918 = vmatpush.bf16.msra.mxu2 %v3205_v16  ;;  %v3254_v16 = vld [vmem:[%s5552_s3 + $0x2d0] sm:$0xf0] }
  0xb4   :  { %1944 = vmatpush.bf16.msrb.mxu0 %v2953_v21  ;;  %v3257_v17 = vor.u32 %v3634_v14, %v3254_v16  ;;  %v3648_v14 = vld [vmem:[%s5552_s3 + $0x32c] sm:$0xf0] }
  0xb5   :  { %1957 = vmatpush.bf16.msrb.mxu1 %v3081_v19  ;;  %v2972_v19 = vld [vmem:[%s5552_s3 + $0x88] sm:$0xf] }
  0xb6   :  { %v3681_v58 = vpop.eup %3680 }
  0xb7   :  { %v1038_v59 = vadd.f32 1.0, %v3681_v58  ;;  %1919 = vmatpush.bf16.msra.mxu2 %v3189_v29 }
  0xb8   :  { %1945 = vmatpush.bf16.msrb.mxu0 %v2937_v30  ;;  %v3062_v30 = vld [vmem:[%s5552_s3 + $0x150] sm:$0xf0] }
  0xb9   :  { %3682 = vrcp.f32 %v1038_v59  ;;  %v1053_v18 = vand.u32 2147483648, %v1038_v59  ;;  %vm1047_vm0 = vweird.f32 %v1038_v59  ;;  %v1051_v21 = vand.u32 2147483647, %v1038_v59 }
  0xba   :  { %v3065_v34 = vor.u32 %v3586_v27, %v3062_v30  ;;  %v3238_v27 = vld [vmem:[%s5552_s3 + $0x2b0] sm:$0xf0]  ;;  %v2956_v30 = vld [vmem:[%s5552_s3 + $0x68] sm:$0xf] }
  0xbb   :  { %v1054_v55 = vor.u32 1.1754944e-38, %v1053_v18  ;;  %vm1052_vm3 = vcmp.eq.f32.partialorder %v1051_v21, 8.507059e+37  ;;  %1920 = vmatpush.bf16.msra.mxu2 %v3173_v42  ;;  %v2989_v18 = vor.u32 %v3569_v8, %v2988_v7  ;;  %v2957_v35 = vor.u32 %v3561_v31, %v2956_v30 }
  0xbc   :  { %1946 = vmatpush.bf16.msrb.mxu0 %v2921_v36  ;;  %v3582_v36 = vld [vmem:[%s5552_s3 + $0x124] sm:$0xf]  ;;  %1958 = vmatpush.bf16.msrb.mxu1 %v3065_v34  ;;  %v172_v42 = vperm.slane %v4675_v1, 2 }
  0xbd   :  { %v3049_v45 = vor.u32 %v3582_v36, %v3046_v43  ;;  %v3626_v34 = vld [vmem:[%s5552_s3 + $0x284] sm:$0xf]  ;;  %v2940_v36 = vld [vmem:[%s5552_s3 + $0x48] sm:$0xf] }
  0xbf   :  { %v3683_v11 = vpop.eup %3682  ;;  %1921 = vmatpush.bf16.msra.mxu2 %v3157_v61 }
  0xc0   :  { %1947 = vmatpush.bf16.msrb.mxu0 %v2905_v48  ;;  %v1043_v15 = vmul.f32 %v3683_v11, %v1038_v59  ;;  %vm1048_vm1 = vweird.f32 %v3683_v11  ;;  %v879_v22 = vpop.f32.mrf.mxu0  ;;  %v3004_v48 = vld [vmem:[%s5552_s3 + $0xc8] sm:$0xf]  ;;  %v3573_v59 = vld [vmem:[%s5552_s3 + $0xd4] sm:$0xf0]  ;;  %1959 = vmatpush.bf16.msrb.mxu1 %v3049_v45 }
  0xc1   :  { %v880_v23 = vadd.f32 %v879_v22, %v171_v10  ;;  %v892_v24 = vpop.f32.mrf.mxu1  ;;  %vm4814_vm2 = vmor %vm1047_vm0, %vm1048_vm1  ;;  %v3005_v6 = vor.u32 %v3573_v59, %v3004_v48  ;;  %v3273_v10 = vor.u32 %v3638_v4, %v3270_v5  ;;  %v3364_v22 = vld [vmem:[%s5552_s3 + $0x3a0] sm:$0xf]  ;;  %v3652_v59 = vld [vmem:[%s5552_s3 + $0x34c] sm:$0xf0]  ;;  %v3193_v4 = vor.u32 %v3618_v0, %v3190_v2 }
  0xc2   :  { %v1044_v20 = vsub.f32 1.0, %v1043_v15  ;;  %v3381_v15 = vor.u32 %v3668_v13, %v3380_v12  ;;  %v3300_v13 = vld [vmem:[%s5552_s3 + $0x320] sm:$0xf]  ;;  %v2974_v2 = vld [vmem:[%s5552_s3 + $0x98] sm:$0xf0] }
  0xc3   :  { %v893_v33 = vadd.f32 %v892_v24, %v880_v23  ;;  %1966 = vmatpush.bf16.msrb.mxu2 %v3273_v10  ;;  %v3664_v23 = vld [vmem:[%s5552_s3 + $0x3ac] sm:$0xf0]  ;;  %v3630_v24 = vld [vmem:[%s5552_s3 + $0x2a4] sm:$0xf]  ;;  %v2908_v10 = vld [vmem:[%s5552_s3 + $0x8] sm:$0xf] }
  0xc4   :  { %v1045_v28 = vmul.f32 %v3683_v11, %v1044_v20  ;;  %v3565_v20 = vld [vmem:[%s5552_s3 + $0x94] sm:$0xf0]  ;;  %1928 = vmatpush.bf16.msra.mxu3 %v3381_v15  ;;  %v3365_v26 = vor.u32 %v3664_v23, %v3364_v22  ;;  %v3614_v15 = vld [vmem:[%s5552_s3 + $0x224] sm:$0xf] }
  0xc5   :  { %v2973_v29 = vor.u32 %v3565_v20, %v2972_v19  ;;  %v3301_v19 = vor.u32 %v3648_v14, %v3300_v13  ;;  %v3174_v20 = vld [vmem:[%s5552_s3 + $0x230] sm:$0xf0]  ;;  %v2958_v13 = vld [vmem:[%s5552_s3 + $0x78] sm:$0xf0]  ;;  %v3658_v14 = vld [vmem:[%s5552_s3 + $0x384] sm:$0xf] }
  0xc6   :  { %v1046_v60 = vadd.f32 %v3683_v11, %v1045_v28  ;;  %v3241_v28 = vor.u32 %v3630_v24, %v3238_v27  ;;  %v3148_v24 = vld [vmem:[%s5552_s3 + $0x1e8] sm:$0xf] }
  0xc7   :  { %1967 = vmatpush.bf16.msrb.mxu2 %v3257_v17  ;;  %v3575_v17 = vld [vmem:[%s5552_s3 + $0xec] sm:$0xf] }
  0xc8   :  { %v905_v51 = vpop.f32.mrf.mxu2  ;;  %v1050_v37 = vsel %vm4814_vm2, %v3683_v11, %v1046_v60  ;;  %v881_v49 = vpop.f32.mrf.mxu0  ;;  %1929 = vmatpush.bf16.msra.mxu3 %v3365_v26  ;;  %v3177_v26 = vor.u32 %v3614_v15, %v3174_v20  ;;  %v3084_v15 = vld [vmem:[%s5552_s3 + $0x168] sm:$0xf] }
  0xc9   :  { %v906_v38 = vadd.f32 %v905_v51, %v893_v33  ;;  %v918_v39 = vpop.f32.mrf.mxu3  ;;  %v1055_v44 = vsel %vm1052_vm3, %v1054_v55, %v1050_v37  ;;  %v894_v52 = vpop.f32.mrf.mxu1  ;;  %v3348_v55 = vld [vmem:[%s5552_s3 + $0x380] sm:$0xf]  ;;  %v3660_v33 = vld [vmem:[%s5552_s3 + $0x38c] sm:$0xf0]  ;;  %v3222_v51 = vld [vmem:[%s5552_s3 + $0x290] sm:$0xf0] }
  0xca   :  { %v1102_v46 = vmul.f32 %v1055_v44, %v4720_v32  ;;  %v3578_v32 = vld [vmem:[%s5552_s3 + $0x104] sm:$0xf]  ;;  %v3349_v60 = vor.u32 %v3660_v33, %v3348_v55  ;;  %v3225_v56 = vor.u32 %v3626_v34, %v3222_v51  ;;  %v3557_v37 = vld [vmem:[%s5552_s3 + $0x54] sm:$0xf0]  ;;  %v3206_v44 = vld [vmem:[%s5552_s3 + $0x270] sm:$0xf0] }
  0xcb   :  { %v4839_v47 = vadd.f32 %v918_v39, %v906_v38  ;;  %v3033_v63 = vor.u32 %v3578_v32, %v3030_v62  ;;  %1968 = vmatpush.bf16.msrb.mxu2 %v3241_v28  ;;  %v3332_v38 = vld [vmem:[%s5552_s3 + $0x360] sm:$0xf]  ;;  %v3656_v39 = vld [vmem:[%s5552_s3 + $0x36c] sm:$0xf0]  ;;  %v3209_v48 = vor.u32 %v3622_v40, %v3206_v44  ;;  %v2941_v52 = vor.u32 %v3557_v37, %v2940_v36  ;;  %v3158_v37 = vld [vmem:[%s5552_s3 + $0x210] sm:$0xf0] }
  0xcc   :  { %v4853_v57 = vpack.c.bf16 %v1102_v46, %v1102_v46  ;;  %1930 = vmatpush.bf16.msra.mxu3 %v3349_v60  ;;  %v3333_v43 = vor.u32 %v3656_v39, %v3332_v38  ;;  %v2924_v46 = vld [vmem:[%s5552_s3 + $0x28] sm:$0xf]  ;;  %v3284_v33 = vld [vmem:[%s5552_s3 + $0x300] sm:$0xf]  ;;  %v3644_v34 = vld [vmem:[%s5552_s3 + $0x30c] sm:$0xf0] }
  0xcd   :  { %v2895_v58 = vmul.f32 -1.442695, %v4839_v47  ;;  %1960 = vmatpush.bf16.msrb.mxu1 %v3033_v63  ;;  %v3610_v60 = vld [vmem:[%s5552_s3 + $0x204] sm:$0xf]  ;;  %v3285_v36 = vor.u32 %v3644_v34, %v3284_v33  ;;  %v3132_v40 = vld [vmem:[%s5552_s3 + $0x1c8] sm:$0xf] }
  0xce   :  { %1896 = vmatmul.bf16.vlgmr.msra.gmra.mxu0 %v4853_v57  ;;  %v3398_v44 = vld [vmem:[%s5552_s3 + $0x3f0] sm:$0xf0]  ;;  %v3052_v33 = vld [vmem:[%s5552_s3 + $0x128] sm:$0xf]  ;;  %v3551_v34 = vld [vmem:[%s5552_s3 + $0x2c] sm:$0xf] }
  0xcf   :  { %3684 = vpow2.f32 %v2895_v58  ;;  %1992 = vmatpush.bf16.msra.mxu0 %v3021_v50  ;;  %1969 = vmatpush.bf16.msrb.mxu2 %v3225_v56  ;;  %v3316_v58 = vld [vmem:[%s5552_s3 + $0x340] sm:$0xf] }
  0xd0   :  { %v907_v9 = vpop.f32.mrf.mxu2  ;;  %1931 = vmatpush.bf16.msra.mxu3 %v3333_v43  ;;  %v3317_v63 = vor.u32 %v3652_v59, %v3316_v58  ;;  %v3670_v43 = vld [vmem:[%s5552_s3 + $0x3e4] sm:$0xf]  ;;  %v3116_v58 = vld [vmem:[%s5552_s3 + $0x1a8] sm:$0xf]  ;;  %v3601_v59 = vld [vmem:[%s5552_s3 + $0x1b4] sm:$0xf0] }
  0xd1   :  { %v920_v11 = vpop.f32.mrf.mxu3  ;;  %v2925_v9 = vor.u32 %v3553_v53, %v2924_v46  ;;  %v3567_v46 = vld [vmem:[%s5552_s3 + $0xac] sm:$0xf]  ;;  %v3666_v53 = vld [vmem:[%s5552_s3 + $0x3c4] sm:$0xf]  ;;  %v3117_v0 = vor.u32 %v3601_v59, %v3116_v58  ;;  %v3036_v59 = vld [vmem:[%s5552_s3 + $0x108] sm:$0xf] }
  0xd2   :  { %v3549_v11 = vld [vmem:[%s5552_s3 + $0x14] sm:$0xf0]  ;;  %v3054_v58 = vld [vmem:[%s5552_s3 + $0x138] sm:$0xf0] }
  0xd3   :  { %1993 = vmatpush.bf16.msra.mxu0 %v3005_v6  ;;  %1970 = vmatpush.bf16.msrb.mxu2 %v3209_v48  ;;  %v2909_v28 = vor.u32 %v3549_v11, %v2908_v10  ;;  %v3401_v48 = vor.u32 %v3670_v43, %v3398_v44  ;;  %v3100_v6 = vld [vmem:[%s5552_s3 + $0x188] sm:$0xf] }
  0xd4   :  { %1932 = vmatpush.bf16.msra.mxu3 %v3317_v63  ;;  %v3563_v63 = vld [vmem:[%s5552_s3 + $0x8c] sm:$0xf] }
  0xd5   :  { %v3685_v21 = vpop.eup %3684  ;;  %v2977_v10 = vor.u32 %v3563_v63, %v2974_v2  ;;  %v3607_v63 = vld [vmem:[%s5552_s3 + $0x1ec] sm:$0xf] }
  0xd6   :  { %v1039_v25 = vadd.f32 1.0, %v3685_v21 }
  0xd7   :  { %1994 = vmatpush.bf16.msra.mxu0 %v2989_v18  ;;  %v3022_v18 = vld [vmem:[%s5552_s3 + $0xf8] sm:$0xf0]  ;;  %1971 = vmatpush.bf16.msrb.mxu2 %v3193_v4  ;;  %v3366_v4 = vld [vmem:[%s5552_s3 + $0x3b0] sm:$0xf0] }
  0xd8   :  { %3686 = vrcp.f32 %v1039_v25  ;;  %v1066_v49 = vand.u32 2147483647, %v1039_v25  ;;  %v1068_v50 = vand.u32 2147483648, %v1039_v25  ;;  %vm1062_vm4 = vweird.f32 %v1039_v25  ;;  %1933 = vmatpush.bf16.msra.mxu3 %v3301_v19 }
  0xd9   :  { %v3025_v31 = vor.u32 %v3575_v17, %v3022_v18  ;;  %v3350_v17 = vld [vmem:[%s5552_s3 + $0x390] sm:$0xf0]  ;;  %v173_v19 = vperm.slane %v4675_v1, 3  ;;  %v3068_v1 = vld [vmem:[%s5552_s3 + $0x148] sm:$0xf] }
  0xda   :  { %vm4971_vm7 = vcmp.eq.f32.partialorder %v1066_v49, 8.507059e+37  ;;  %v1069_v7 = vor.u32 1.1754944e-38, %v1068_v50  ;;  %v3353_v18 = vor.u32 %v3658_v14, %v3350_v17  ;;  %v3286_v14 = vld [vmem:[%s5552_s3 + $0x310] sm:$0xf0] }
  0xdb   :  { %1995 = vmatpush.bf16.msra.mxu0 %v2973_v29  ;;  %1972 = vmatpush.bf16.msrb.mxu2 %v3177_v26  ;;  %v3589_v26 = vld [vmem:[%s5552_s3 + $0x154] sm:$0xf0] }
  0xdc   :  { %1934 = vmatpush.bf16.msra.mxu3 %v3285_v36  ;;  %v3650_v36 = vld [vmem:[%s5552_s3 + $0x344] sm:$0xf] }
  0xde   :  { %v3687_v41 = vpop.eup %3686  ;;  %1948 = vmatmul.bf16.vlgmr.msrb.gmra.mxu0 %v4853_v57 }
  0xdf   :  { %v1058_v45 = vmul.f32 %v3687_v41, %v1039_v25  ;;  %1996 = vmatpush.bf16.msra.mxu0 %v2957_v35  ;;  %vm1063_vm5 = vweird.f32 %v3687_v41  ;;  %v3609_v25 = vld [vmem:[%s5552_s3 + $0x1f4] sm:$0xf0]  ;;  %v3006_v35 = vld [vmem:[%s5552_s3 + $0xd8] sm:$0xf0] }
  0xe0   :  { %v931_v32 = vpop.f32.mrf.mxu0  ;;  %vm4967_vm6 = vmor %vm1062_vm4, %vm1063_vm5  ;;  %v3149_v51 = vor.u32 %v3609_v25, %v3148_v24  ;;  %1979 = vmatpush.bf16.msrb.mxu3 %v3401_v48  ;;  %v3654_v24 = vld [vmem:[%s5552_s3 + $0x364] sm:$0xf]  ;;  %v3334_v25 = vld [vmem:[%s5552_s3 + $0x370] sm:$0xf0] }
  0xe1   :  { %v1059_v54 = vsub.f32 1.0, %v1058_v45  ;;  %v932_v61 = vadd.f32 %v931_v32, %v172_v42  ;;  %v944_v62 = vpop.f32.mrf.mxu1  ;;  %v3161_v42 = vor.u32 %v3610_v60, %v3158_v37  ;;  %v2926_v60 = vld [vmem:[%s5552_s3 + $0x38] sm:$0xf0]  ;;  %v3318_v37 = vld [vmem:[%s5552_s3 + $0x350] sm:$0xf0] }
  0xe2   :  { %v2910_v48 = vld [vmem:[%s5552_s3 + $0x18] sm:$0xf0] }
  0xe3   :  { %v1060_v3 = vmul.f32 %v3687_v41, %v1059_v54  ;;  %v945_v8 = vadd.f32 %v944_v62, %v932_v61  ;;  %1997 = vmatpush.bf16.msra.mxu0 %v2941_v52  ;;  %v2990_v52 = vld [vmem:[%s5552_s3 + $0xb8] sm:$0xf0]  ;;  %v3382_v54 = vld [vmem:[%s5552_s3 + $0x3d0] sm:$0xf0]  ;;  %1973 = vmatpush.bf16.msrb.mxu2 %v3161_v42  ;;  %v3321_v42 = vor.u32 %v3650_v36, %v3318_v37 }
  0xe4   :  { %v3385_v61 = vor.u32 %v3666_v53, %v3382_v54  ;;  %v2993_v62 = vor.u32 %v3567_v46, %v2990_v52  ;;  %v3547_v46 = vld [vmem:[%s5552_s3 + $0xc] sm:$0xf]  ;;  %v3646_v53 = vld [vmem:[%s5552_s3 + $0x324] sm:$0xf]  ;;  %v3302_v54 = vld [vmem:[%s5552_s3 + $0x330] sm:$0xf0] }
  0xe5   :  { %v1061_v12 = vadd.f32 %v3687_v41, %v1060_v3  ;;  %v3662_v3 = vld [vmem:[%s5552_s3 + $0x3a4] sm:$0xf]  ;;  %v3305_v2 = vor.u32 %v3646_v53, %v3302_v54 }
  0xe6   :  { %1980 = vmatpush.bf16.msrb.mxu3 %v3385_v61  ;;  %v3581_v61 = vld [vmem:[%s5552_s3 + $0x114] sm:$0xf0] }
  0xe7   :  { %v1065_v21 = vsel %vm4967_vm6, %v3687_v41, %v1061_v12  ;;  %1998 = vmatpush.bf16.msra.mxu0 %v2925_v9  ;;  %v3605_v41 = vld [vmem:[%s5552_s3 + $0x1d4] sm:$0xf0]  ;;  %v3369_v9 = vor.u32 %v3662_v3, %v3366_v4  ;;  %v3559_v12 = vld [vmem:[%s5552_s3 + $0x6c] sm:$0xf] }
  0xe8   :  { %v957_v16 = vpop.f32.mrf.mxu2  ;;  %v1070_v27 = vsel %vm4971_vm7, %v1069_v7, %v1065_v21  ;;  %v933_v55 = vpop.f32.mrf.mxu0  ;;  %v3133_v49 = vor.u32 %v3605_v41, %v3132_v40  ;;  %v3597_v7 = vld [vmem:[%s5552_s3 + $0x194] sm:$0xf0]  ;;  %v2961_v20 = vor.u32 %v3559_v12, %v2958_v13  ;;  %v3555_v21 = vld [vmem:[%s5552_s3 + $0x4c] sm:$0xf]  ;;  %v3037_v12 = vor.u32 %v3581_v61, %v3036_v59  ;;  %v3642_v13 = vld [vmem:[%s5552_s3 + $0x304] sm:$0xf] }
  0xe9   :  { %v958_v22 = vadd.f32 %v957_v16, %v945_v8  ;;  %v970_v23 = vpop.f32.mrf.mxu3  ;;  %v1103_v29 = vmul.f32 %v1070_v27, %v4839_v47  ;;  %v946_v56 = vpop.f32.mrf.mxu1  ;;  %v3571_v47 = vld [vmem:[%s5552_s3 + $0xcc] sm:$0xf]  ;;  %v3101_v11 = vor.u32 %v3597_v7, %v3100_v6  ;;  %v3593_v16 = vld [vmem:[%s5552_s3 + $0x174] sm:$0xf0]  ;;  %v2913_v7 = vor.u32 %v3547_v46, %v2910_v48  ;;  %v3070_v46 = vld [vmem:[%s5552_s3 + $0x158] sm:$0xf0] }
  0xea   :  { %v3009_v45 = vor.u32 %v3571_v47, %v3006_v35  ;;  %1981 = vmatpush.bf16.msrb.mxu3 %v3369_v9  ;;  %v3069_v35 = vor.u32 %v3589_v26, %v3068_v1  ;;  %v3585_v41 = vld [vmem:[%s5552_s3 + $0x134] sm:$0xf0]  ;;  %v3196_v48 = vld [vmem:[%s5552_s3 + $0x248] sm:$0xf] }
  0xeb   :  { %v5010_v30 = vadd.f32 %v970_v23, %v958_v22  ;;  %v5030_v38 = vpack.c.bf16 %v1103_v29, %v1103_v29  ;;  %1999 = vmatpush.bf16.msra.mxu0 %v2909_v28  ;;  %v3085_v22 = vor.u32 %v3593_v16, %v3084_v15  ;;  %v2942_v23 = vld [vmem:[%s5552_s3 + $0x58] sm:$0xf0]  ;;  %v3337_v28 = vor.u32 %v3654_v24, %v3334_v25  ;;  %v3641_v9 = vld [vmem:[%s5552_s3 + $0x2f4] sm:$0xf0]  ;;  %v3180_v61 = vld [vmem:[%s5552_s3 + $0x228] sm:$0xf] }
  0xec   :  { %v2945_v55 = vor.u32 %v3555_v21, %v2942_v23  ;;  %v3053_v52 = vor.u32 %v3585_v41, %v3052_v33  ;;  %v3637_v23 = vld [vmem:[%s5552_s3 + $0x2d4] sm:$0xf0]  ;;  %v3289_v24 = vor.u32 %v3642_v13, %v3286_v14  ;;  %v3212_v41 = vld [vmem:[%s5552_s3 + $0x268] sm:$0xf] }
  0xed   :  { %v2896_v39 = vmul.f32 -1.442695, %v5010_v30  ;;  %1909 = vmatmul.bf16.vlgmr.msra.gmra.mxu1 %v5030_v38 }
  0xee   :  { %2005 = vmatpush.bf16.msra.mxu1 %v3149_v51  ;;  %2000 = vmatmul.bf16.vlgmr.msra.gmra.mxu0 %v4853_v57 }
  0xef   :  { %3688 = vpow2.f32 %v2896_v39  ;;  %2044 = vmatpush.bf16.msrb.mxu0 %v3025_v31  ;;  %1982 = vmatpush.bf16.msrb.mxu3 %v3353_v18 }
  0xf0   :  { %v959_v50 = vpop.f32.mrf.mxu2 }
  0xf1   :  { %v972_v32 = vpop.f32.mrf.mxu3 }
  0xf2   :  { %2006 = vmatpush.bf16.msra.mxu1 %v3133_v49  ;;  %v3621_v49 = vld [vmem:[%s5552_s3 + $0x254] sm:$0xf0] }
  0xf3   :  { %2045 = vmatpush.bf16.msrb.mxu0 %v3009_v45  ;;  %1983 = vmatpush.bf16.msrb.mxu3 %v3337_v28  ;;  %v2929_v45 = vor.u32 %v3551_v34, %v2926_v60  ;;  %v3118_v28 = vld [vmem:[%s5552_s3 + $0x1b8] sm:$0xf0]  ;;  %v3595_v34 = vld [vmem:[%s5552_s3 + $0x18c] sm:$0xf]  ;;  %v3197_v54 = vor.u32 %v3621_v49, %v3196_v48 }
  0xf4   :  { %v3102_v60 = vld [vmem:[%s5552_s3 + $0x198] sm:$0xf0]  ;;  %v3615_v49 = vld [vmem:[%s5552_s3 + $0x22c] sm:$0xf] }
  0xf5   :  { %v3689_v5 = vpop.eup %3688  ;;  %v3105_v36 = vor.u32 %v3595_v34, %v3102_v60  ;;  %v3230_v34 = vld [vmem:[%s5552_s3 + $0x298] sm:$0xf0]  ;;  %v3356_v60 = vld [vmem:[%s5552_s3 + $0x388] sm:$0xf] }
  0xf6   :  { %v5083_v8 = vadd.f32 1.0, %v3689_v5  ;;  %2007 = vmatpush.bf16.msra.mxu1 %v3117_v0  ;;  %v3150_v0 = vld [vmem:[%s5552_s3 + $0x1f8] sm:$0xf0] }
  0xf7   :  { %2046 = vmatpush.bf16.msrb.mxu0 %v2993_v62  ;;  %1984 = vmatpush.bf16.msrb.mxu3 %v3321_v42  ;;  %v3153_v17 = vor.u32 %v3607_v63, %v3150_v0  ;;  %v3625_v42 = vld [vmem:[%s5552_s3 + $0x274] sm:$0xf0] }
  0xf8   :  { %3690 = vrcp.f32 %v5083_v8  ;;  %v1083_v51 = vand.u32 2147483648, %v5083_v8  ;;  %vm1077_vm8 = vweird.f32 %v5083_v8  ;;  %v1081_v40 = vand.u32 2147483647, %v5083_v8 }
  0xfa   :  { %2008 = vmatpush.bf16.msra.mxu1 %v3101_v11  ;;  %v1084_v50 = vor.u32 1.1754944e-38, %v1083_v51  ;;  %vm5162_vm11 = vcmp.eq.f32.partialorder %v1081_v40, 8.507059e+37  ;;  %v3086_v40 = vld [vmem:[%s5552_s3 + $0x178] sm:$0xf0] }
  0xfb   :  { %2047 = vmatpush.bf16.msrb.mxu0 %v2977_v10  ;;  %1985 = vmatpush.bf16.msrb.mxu3 %v3305_v2 }
  0xfd   :  { %1961 = vmatmul.bf16.vlgmr.msrb.gmra.mxu1 %v5030_v38 }
  0xfe   :  { %v3691_v27 = vpop.eup %3690  ;;  %2009 = vmatpush.bf16.msra.mxu1 %v3085_v22 }
  0xff   :  { %v1073_v29 = vmul.f32 %v3691_v27, %v5083_v8  ;;  %2048 = vmatpush.bf16.msrb.mxu0 %v2961_v20  ;;  %vm1078_vm9 = vweird.f32 %v3691_v27  ;;  %v3276_v8 = vld [vmem:[%s5552_s3 + $0x2e8] sm:$0xf]  ;;  %v3134_v20 = vld [vmem:[%s5552_s3 + $0x1d8] sm:$0xf0]  ;;  %1986 = vmatpush.bf16.msrb.mxu3 %v3289_v24 }
 0x100   :  { %v983_v31 = vpop.f32.mrf.mxu0  ;;  %vm5152_vm10 = vmor %vm1077_vm8, %vm1078_vm9  ;;  %v3277_v18 = vor.u32 %v3641_v9, %v3276_v8  ;;  %v3164_v8 = vld [vmem:[%s5552_s3 + $0x208] sm:$0xf]  ;;  %v3613_v9 = vld [vmem:[%s5552_s3 + $0x214] sm:$0xf0] }
 0x101   :  { %v984_v56 = vadd.f32 %v983_v31, %v173_v19  ;;  %v996_v47 = vpop.f32.mrf.mxu1  ;;  %v1074_v39 = vsub.f32 1.0, %v1073_v29  ;;  %v3603_v19 = vld [vmem:[%s5552_s3 + $0x1cc] sm:$0xf]  ;;  %v3244_v31 = vld [vmem:[%s5552_s3 + $0x2a8] sm:$0xf] }
 0x102   :  { %2010 = vmatpush.bf16.msra.mxu1 %v3069_v35  ;;  %v3137_v25 = vor.u32 %v3603_v19, %v3134_v20  ;;  %v3165_v19 = vor.u32 %v3613_v9, %v3164_v8  ;;  %v3262_v24 = vld [vmem:[%s5552_s3 + $0x2d8] sm:$0xf0]  ;;  %v3663_v8 = vld [vmem:[%s5552_s3 + $0x3ac] sm:$0xf] }
 0x103   :  { %v1075_v43 = vmul.f32 %v3691_v27, %v1074_v39  ;;  %v997_v44 = vadd.f32 %v996_v47, %v984_v56  ;;  %2049 = vmatpush.bf16.msrb.mxu0 %v2945_v55  ;;  %v3228_v56 = vld [vmem:[%s5552_s3 + $0x288] sm:$0xf]  ;;  %v3629_v47 = vld [vmem:[%s5552_s3 + $0x294] sm:$0xf0]  ;;  %v3591_v39 = vld [vmem:[%s5552_s3 + $0x16c] sm:$0xf] }
 0x104   :  { %v3229_v37 = vor.u32 %v3629_v47, %v3228_v56  ;;  %v3374_v9 = vld [vmem:[%s5552_s3 + $0x3b8] sm:$0xf0] }
 0x105   :  { %v1076_v32 = vadd.f32 %v3691_v27, %v1075_v43  ;;  %v3089_v43 = vor.u32 %v3591_v39, %v3086_v40  ;;  %v3657_v39 = vld [vmem:[%s5552_s3 + $0x374] sm:$0xf0] }
 0x106   :  { %2011 = vmatpush.bf16.msra.mxu1 %v3053_v52 }
 0x107   :  { %v1080_v3 = vsel %vm5152_vm10, %v3691_v27, %v1076_v32  ;;  %2050 = vmatpush.bf16.msrb.mxu0 %v2929_v45  ;;  %v3599_v27 = vld [vmem:[%s5552_s3 + $0x1ac] sm:$0xf] }
 0x108   :  { %v1009_v62 = vpop.f32.mrf.mxu2  ;;  %v985_v6 = vpop.f32.mrf.mxu0  ;;  %v1085_v10 = vsel %vm5162_vm11, %v1084_v50, %v1080_v3  ;;  %v3121_v55 = vor.u32 %v3599_v27, %v3118_v28  ;;  %v3587_v45 = vld [vmem:[%s5552_s3 + $0x14c] sm:$0xf] }
 0x109   :  { %v1010_v4 = vadd.f32 %v1009_v62, %v997_v44  ;;  %v1022_v5 = vpop.f32.mrf.mxu3  ;;  %v998_v11 = vpop.f32.mrf.mxu1  ;;  %v1104_v15 = vmul.f32 %v1085_v10, %v5010_v30  ;;  %v3260_v30 = vld [vmem:[%s5552_s3 + $0x2c8] sm:$0xf]  ;;  %v3213_v44 = vor.u32 %v3625_v42, %v3212_v41  ;;  %v3073_v53 = vor.u32 %v3587_v45, %v3070_v46  ;;  %v3583_v32 = vld [vmem:[%s5552_s3 + $0x12c] sm:$0xf]  ;;  %v3617_v62 = vld [vmem:[%s5552_s3 + $0x234] sm:$0xf0] }
 0x10a   :  { %2012 = vmatpush.bf16.msra.mxu1 %v3037_v12  ;;  %v3261_v26 = vor.u32 %v3637_v23, %v3260_v30  ;;  %v3057_v3 = vor.u32 %v3583_v32, %v3054_v58  ;;  %v3038_v6 = vld [vmem:[%s5552_s3 + $0x118] sm:$0xf0]  ;;  %v3639_v11 = vld [vmem:[%s5552_s3 + $0x2ec] sm:$0xf]  ;;  %v3653_v45 = vld [vmem:[%s5552_s3 + $0x354] sm:$0xf0] }
 0x10b   :  { %v5195_v16 = vadd.f32 %v1022_v5, %v1010_v4  ;;  %v5203_v21 = vpack.c.bf16 %v1104_v15, %v1104_v15  ;;  %2051 = vmatpush.bf16.msrb.mxu0 %v2913_v7  ;;  %v3181_v4 = vor.u32 %v3617_v62, %v3180_v61  ;;  %v3579_v5 = vld [vmem:[%s5552_s3 + $0x10c] sm:$0xf]  ;;  %v3278_v12 = vld [vmem:[%s5552_s3 + $0x2f8] sm:$0xf0]  ;;  %v3404_v15 = vld [vmem:[%s5552_s3 + $0x3e8] sm:$0xf] }
 0x10c   :  { %v3041_v14 = vor.u32 %v3579_v5, %v3038_v6  ;;  %v3635_v23 = vld [vmem:[%s5552_s3 + $0x2cc] sm:$0xf]  ;;  %v3292_v61 = vld [vmem:[%s5552_s3 + $0x308] sm:$0xf]  ;;  %v3645_v62 = vld [vmem:[%s5552_s3 + $0x314] sm:$0xf0] }
 0x10d   :  { %v2897_v22 = vmul.f32 -1.442695, %v5195_v16  ;;  %1922 = vmatmul.bf16.vlgmr.msra.gmra.mxu2 %v5203_v21  ;;  %2013 = vmatmul.bf16.vlgmr.msra.gmra.mxu1 %v5030_v38  ;;  %v3631_v28 = vld [vmem:[%s5552_s3 + $0x2ac] sm:$0xf]  ;;  %v3390_v6 = vld [vmem:[%s5552_s3 + $0x3d8] sm:$0xf0] }
 0x10e   :  { %2057 = vmatpush.bf16.msrb.mxu1 %v3153_v17  ;;  %2018 = vmatpush.bf16.msra.mxu2 %v3277_v18  ;;  %v3673_v17 = vld [vmem:[%s5552_s3 + $0x3f4] sm:$0xf0]  ;;  %v3619_v42 = vld [vmem:[%s5552_s3 + $0x24c] sm:$0xf] }
 0x10f   :  { %3692 = vpow2.f32 %v2897_v22  ;;  %2052 = vmatmul.bf16.vlgmr.msrb.gmra.mxu0 %v4853_v57  ;;  %v3633_v57 = vld [vmem:[%s5552_s3 + $0x2b4] sm:$0xf0]  ;;  %v3281_v22 = vor.u32 %v3639_v11, %v3278_v12  ;;  %v3405_v30 = vor.u32 %v3673_v17, %v3404_v15  ;;  %v3611_v58 = vld [vmem:[%s5552_s3 + $0x20c] sm:$0xf]  ;;  %v3342_v15 = vld [vmem:[%s5552_s3 + $0x378] sm:$0xf0] }
 0x110   :  { %v1011_v1 = vpop.f32.mrf.mxu2  ;;  %v3245_v33 = vor.u32 %v3633_v57, %v3244_v31  ;;  %v3372_v31 = vld [vmem:[%s5552_s3 + $0x3a8] sm:$0xf]  ;;  %v3665_v57 = vld [vmem:[%s5552_s3 + $0x3b4] sm:$0xf0]  ;;  %v3667_v5 = vld [vmem:[%s5552_s3 + $0x3cc] sm:$0xf] }
 0x111   :  { %v1024_v29 = vpop.f32.mrf.mxu3  ;;  %v3388_v1 = vld [vmem:[%s5552_s3 + $0x3c8] sm:$0xf]  ;;  %v3659_v12 = vld [vmem:[%s5552_s3 + $0x38c] sm:$0xf] }
 0x112   :  { %2058 = vmatpush.bf16.msrb.mxu1 %v3137_v25  ;;  %2019 = vmatpush.bf16.msra.mxu2 %v3261_v26  ;;  %v3265_v26 = vor.u32 %v3635_v23, %v3262_v24  ;;  %v3246_v29 = vld [vmem:[%s5552_s3 + $0x2b8] sm:$0xf0] }
 0x113   :  { %v3310_v23 = vld [vmem:[%s5552_s3 + $0x338] sm:$0xf0] }
 0x115   :  { %v3693_v51 = vpop.eup %3692 }
 0x116   :  { %v1041_v35 = vadd.f32 1.0, %v3693_v51  ;;  %2059 = vmatpush.bf16.msrb.mxu1 %v3121_v55  ;;  %2020 = vmatpush.bf16.msra.mxu2 %v3245_v33  ;;  %v3373_v55 = vor.u32 %v3665_v57, %v3372_v31  ;;  %v3627_v33 = vld [vmem:[%s5552_s3 + $0x28c] sm:$0xf]  ;;  %v3661_v51 = vld [vmem:[%s5552_s3 + $0x394] sm:$0xf0] }
 0x117   :  { %v3233_v56 = vor.u32 %v3627_v33, %v3230_v34  ;;  %v3357_v47 = vor.u32 %v3661_v51, %v3356_v60 }
 0x118   :  { %3694 = vrcp.f32 %v1041_v35  ;;  %v1098_v63 = vand.u32 2147483648, %v1041_v35  ;;  %v1096_v2 = vand.u32 2147483647, %v1041_v35  ;;  %vm1092_vm13 = vweird.f32 %v1041_v35 }
 0x11a   :  { %2060 = vmatpush.bf16.msrb.mxu1 %v3105_v36  ;;  %2021 = vmatpush.bf16.msra.mxu2 %v3229_v37  ;;  %v1099_v10 = vor.u32 1.1754944e-38, %v1098_v63  ;;  %vm1097_vm15 = vcmp.eq.f32.partialorder %v1096_v2, 8.507059e+37  ;;  %v3214_v36 = vld [vmem:[%s5552_s3 + $0x278] sm:$0xf0]  ;;  %v3340_v37 = vld [vmem:[%s5552_s3 + $0x368] sm:$0xf] }
 0x11b   :  { %v3341_v41 = vor.u32 %v3657_v39, %v3340_v37  ;;  %v3671_v63 = vld [vmem:[%s5552_s3 + $0x3ec] sm:$0xf] }
 0x11d   :  { %1974 = vmatmul.bf16.vlgmr.msrb.gmra.mxu2 %v5203_v21 }
 0x11e   :  { %v3695_v50 = vpop.eup %3694  ;;  %2061 = vmatpush.bf16.msrb.mxu1 %v3089_v43  ;;  %2022 = vmatpush.bf16.msra.mxu2 %v3213_v44  ;;  %v3198_v43 = vld [vmem:[%s5552_s3 + $0x258] sm:$0xf0]  ;;  %v3324_v44 = vld [vmem:[%s5552_s3 + $0x348] sm:$0xf] }
 0x11f   :  { %v1088_v52 = vmul.f32 %v3695_v50, %v1041_v35  ;;  %vm1093_vm12 = vweird.f32 %v3695_v50  ;;  %v3623_v35 = vld [vmem:[%s5552_s3 + $0x26c] sm:$0xf]  ;;  %v3201_v46 = vor.u32 %v3619_v42, %v3198_v43  ;;  %v3325_v48 = vor.u32 %v3653_v45, %v3324_v44 }
 0x120   :  { %vm1094_vm14 = vmor %vm1092_vm13, %vm1093_vm12  ;;  %v3217_v40 = vor.u32 %v3623_v35, %v3214_v36 }
 0x121   :  { %v1089_v59 = vsub.f32 1.0, %v1088_v52  ;;  %v3308_v52 = vld [vmem:[%s5552_s3 + $0x328] sm:$0xf] }
 0x122   :  { %2062 = vmatpush.bf16.msrb.mxu1 %v3073_v53  ;;  %2023 = vmatpush.bf16.msra.mxu2 %v3197_v54  ;;  %v3649_v53 = vld [vmem:[%s5552_s3 + $0x334] sm:$0xf0] }
 0x123   :  { %v1090_v0 = vmul.f32 %v3695_v50, %v1089_v59  ;;  %v3309_v32 = vor.u32 %v3649_v53, %v3308_v52  ;;  %v3166_v59 = vld [vmem:[%s5552_s3 + $0x218] sm:$0xf0] }
 0x124   :  { %v3169_v2 = vor.u32 %v3611_v58, %v3166_v59 }
 0x125   :  { %v1091_v7 = vadd.f32 %v3695_v50, %v1090_v0  ;;  %v3406_v0 = vld [vmem:[%s5552_s3 + $0x3f8] sm:$0xf0] }
 0x126   :  { %2063 = vmatpush.bf16.msrb.mxu1 %v3057_v3  ;;  %2024 = vmatpush.bf16.msra.mxu2 %v3181_v4  ;;  %v3293_v3 = vor.u32 %v3645_v62, %v3292_v61  ;;  %v3409_v4 = vor.u32 %v3671_v63, %v3406_v0 }
 0x127   :  { %v1095_v13 = vsel %vm1094_vm14, %v3695_v50, %v1091_v7  ;;  %v3182_v50 = vld [vmem:[%s5552_s3 + $0x238] sm:$0xf0]  ;;  %v3393_v7 = vor.u32 %v3667_v5, %v3390_v6 }
 0x128   :  { %v1100_v18 = vsel %vm1097_vm15, %v1099_v10, %v1095_v13  ;;  %v3185_v54 = vor.u32 %v3615_v49, %v3182_v50  ;;  %v3377_v10 = vor.u32 %v3663_v8, %v3374_v9 }
 0x129   :  { %v1105_v20 = vmul.f32 %v1100_v18, %v5195_v16  ;;  %v3669_v16 = vld [vmem:[%s5552_s3 + $0x3d4] sm:$0xf0] }
 0x12a   :  { %2064 = vmatpush.bf16.msrb.mxu1 %v3041_v14  ;;  %2025 = vmatpush.bf16.msra.mxu2 %v3165_v19  ;;  %v3389_v27 = vor.u32 %v3669_v16, %v3388_v1  ;;  %v3655_v14 = vld [vmem:[%s5552_s3 + $0x36c] sm:$0xf] }
 0x12b   :  { %v5307_v25 = vpack.c.bf16 %v1105_v20, %v1105_v20  ;;  %v3345_v17 = vor.u32 %v3655_v14, %v3342_v15  ;;  %v3651_v19 = vld [vmem:[%s5552_s3 + $0x34c] sm:$0xf]  ;;  %v3326_v20 = vld [vmem:[%s5552_s3 + $0x358] sm:$0xf0] }
 0x12c   :  { %v3643_v16 = vld [vmem:[%s5552_s3 + $0x30c] sm:$0xf] }
 0x12d   :  { %1935 = vmatmul.bf16.vlgmr.msra.gmra.mxu3 %v5307_v25  ;;  %2065 = vmatmul.bf16.vlgmr.msrb.gmra.mxu1 %v5030_v38  ;;  %v3249_v38 = vor.u32 %v3631_v28, %v3246_v29  ;;  %v1238_v28 = vld [vmem:[%s5554_s4] sm:$0xf] }
 0x12e   :  { %2070 = vmatpush.bf16.msrb.mxu2 %v3281_v22  ;;  %2031 = vmatpush.bf16.msra.mxu3 %v3405_v30  ;;  %v3329_v22 = vor.u32 %v3651_v19, %v3326_v20  ;;  %v3647_v30 = vld [vmem:[%s5552_s3 + $0x32c] sm:$0xf]  ;;  %v1240_v31 = vperm.slane %v1238_v28, 0  ;;  %v1241_v51 = vperm.slane %v1238_v28, 1  ;;  %v1242_v37 = vperm.slane %v1238_v28, 2 }
 0x12f   :  { %2026 = vmatmul.bf16.vlgmr.msra.gmra.mxu2 %v5203_v21  ;;  %v3313_v24 = vor.u32 %v3647_v30, %v3310_v23  ;;  %v1243_v6 = vperm.slane %v1238_v28, 3 }
 0x132   :  { %2071 = vmatpush.bf16.msrb.mxu2 %v3265_v26  ;;  %2032 = vmatpush.bf16.msra.mxu3 %v3389_v27  ;;  %v3294_v26 = vld [vmem:[%s5552_s3 + $0x318] sm:$0xf0] }
 0x133   :  { %v3297_v27 = vor.u32 %v3643_v16, %v3294_v26 }
 0x136   :  { %2072 = vmatpush.bf16.msrb.mxu2 %v3249_v38  ;;  %2033 = vmatpush.bf16.msra.mxu3 %v3373_v55 }
 0x13a   :  { %2073 = vmatpush.bf16.msrb.mxu2 %v3233_v56  ;;  %2034 = vmatpush.bf16.msra.mxu3 %v3357_v47 }
 0x13d   :  { %1987 = vmatmul.bf16.vlgmr.msrb.gmra.mxu3 %v5307_v25 }
 0x13e   :  { %2074 = vmatpush.bf16.msrb.mxu2 %v3217_v40  ;;  %2035 = vmatpush.bf16.msra.mxu3 %v3341_v41 }
 0x142   :  { %2075 = vmatpush.bf16.msrb.mxu2 %v3201_v46  ;;  %2036 = vmatpush.bf16.msra.mxu3 %v3325_v48 }
 0x146   :  { %2076 = vmatpush.bf16.msrb.mxu2 %v3185_v54  ;;  %2037 = vmatpush.bf16.msra.mxu3 %v3309_v32 }
 0x14a   :  { %2077 = vmatpush.bf16.msrb.mxu2 %v3169_v2  ;;  %2038 = vmatpush.bf16.msra.mxu3 %v3293_v3 }
 0x14b   :  { %v1897_v11 = vpop.f32.mrf.mxu0 }
 0x14c   :  { %v1898_v57 = vadd.f32 %v1897_v11, %v1240_v31 }
 0x14d   :  { %2078 = vmatmul.bf16.vlgmr.msrb.gmra.mxu2 %v5203_v21  ;;  %2039 = vmatmul.bf16.vlgmr.msra.gmra.mxu3 %v5307_v25  ;;  %v3358_v21 = vld [vmem:[%s5552_s3 + $0x398] sm:$0xf0] }
 0x14e   :  { %2083 = vmatpush.bf16.msrb.mxu3 %v3409_v4  ;;  %v3361_v13 = vor.u32 %v3659_v12, %v3358_v21  ;;  %v2096_v4 = vld [vmem:[%s5556_s5] sm:$0xff] }
 0x14f   :  { %v2102_v5 = vperm.slane %v2096_v4, 2  ;;  %v2103_v8 = vperm.slane %v2096_v4, 4  ;;  %v2104_v15 = vperm.slane %v2096_v4, 6  ;;  %v2163_v20 = vperm.slane %v2096_v4, 3 }
 0x150   :  { %v2164_v30 = vperm.slane %v2096_v4, 5  ;;  %v2165_v31 = vperm.slane %v2096_v4, 7 }
 0x151   :  { %v2110_v11 = vperm.slane %v2102_v5, 0 }
 0x152   :  { %2084 = vmatpush.bf16.msrb.mxu3 %v3393_v7  ;;  %v2101_v7 = vperm.slane %v2096_v4, 0 }
 0x153   :  { %v1899_v18 = vpop.f32.mrf.mxu0 }
 0x154   :  { %v2109_v21 = vperm.slane %v2101_v7, 0 }
 0x156   :  { %2085 = vmatpush.bf16.msrb.mxu3 %v3377_v10 }
 0x15a   :  { %2086 = vmatpush.bf16.msrb.mxu3 %v3361_v13 }
 0x15b   :  { %v1949_v1 = vpop.f32.mrf.mxu0 }
 0x15c   :  { %v1950_v56 = vadd.f32 %v1949_v1, %v1241_v51  ;;  %v2112_v1 = vperm.slane %v2104_v15, 0  ;;  %v2173_v51 = vperm.slane %v2165_v31, 1 }
 0x15e   :  { %2087 = vmatpush.bf16.msrb.mxu3 %v3345_v17  ;;  %v2111_v17 = vperm.slane %v2103_v8, 0 }
 0x162   :  { %2088 = vmatpush.bf16.msrb.mxu3 %v3329_v22  ;;  %v2162_v22 = vperm.slane %v2096_v4, 1 }
 0x163   :  { %v1951_v29 = vpop.f32.mrf.mxu0 }
 0x166   :  { %2089 = vmatpush.bf16.msrb.mxu3 %v3313_v24 }
 0x16a   :  { %2090 = vmatpush.bf16.msrb.mxu3 %v3297_v27  ;;  %v1910_v38 = vpop.f32.mrf.mxu1  ;;  %v2171_v27 = vperm.slane %v2163_v20, 1 }
 0x16b   :  { %v1911_v55 = vadd.f32 %v1910_v38, %v1898_v57  ;;  %v2001_v33 = vpop.f32.mrf.mxu0  ;;  %v2170_v57 = vperm.slane %v2162_v22, 1  ;;  %v2172_v38 = vperm.slane %v2164_v30, 1 }
 0x16c   :  { %v2002_v39 = vadd.f32 %v2001_v33, %v1242_v37 }
 0x16d   :  { %2091 = vmatmul.bf16.vlgmr.msrb.gmra.mxu3 %v5307_v25 }
 0x172   :  { %v1912_v34 = vpop.f32.mrf.mxu1 }
 0x173   :  { %v2003_v60 = vpop.f32.mrf.mxu0 }
 0x17a   :  { %v1962_v47 = vpop.f32.mrf.mxu1 }
 0x17b   :  { %v1963_v35 = vadd.f32 %v1962_v47, %v1950_v56 }
 0x182   :  { %v1964_v36 = vpop.f32.mrf.mxu1 }
 0x18a   :  { %v2014_v41 = vpop.f32.mrf.mxu1 }
 0x18b   :  { %v2015_v42 = vadd.f32 %v2014_v41, %v2002_v39  ;;  %v3732_v41 = vmov 0  }
 0x18c   :  { %v2053_v40 = vpop.f32.mrf.mxu0  ;;  %3676 = vset.pattern.permute.xlu1 %v3732_v41 }
 0x18d   :  { %v2054_v12 = vadd.f32 %v2053_v40, %v1243_v6 }
 0x190   :  { %v1923_v43 = vpop.f32.mrf.mxu2 }
 0x191   :  { %v1924_v44 = vadd.f32 %v1923_v43, %v1911_v55  ;;  %v3679_v43 = vld [vmem:[%s5555_s6] ss:$0 sm:$0xff] }
 0x192   :  { %v2016_v25 = vpop.f32.mrf.mxu1 }
 0x194   :  { %v2055_v45 = vpop.f32.mrf.mxu0 }
 0x198   :  { %v1925_v46 = vpop.f32.mrf.mxu2 }
 0x1a0   :  { %v1975_v48 = vpop.f32.mrf.mxu2 }
 0x1a1   :  { %v1976_v49 = vadd.f32 %v1975_v48, %v1963_v35 }
 0x1a8   :  { %v1977_v50 = vpop.f32.mrf.mxu2 }
 0x1a9   :  { %v2098_v50 = vld [vmem:[%s5557_s7] sm:$0xff] }
 0x1aa   :  { %v2066_v52 = vpop.f32.mrf.mxu1  ;;  %v2192_v4 = vperm.slane %v2098_v50, 5  ;;  %v2193_v5 = vperm.slane %v2098_v50, 7 }
 0x1ab   :  { %v2067_v18 = vadd.f32 %v2066_v52, %v2054_v12  ;;  %v2133_v52 = vperm.slane %v2098_v50, 0 }
 0x1ac   :  { %v2201_v20 = vperm.slane %v2193_v5, 1 }
 0x1b0   :  { %v1936_v53 = vpop.f32.mrf.mxu3 }
 0x1b1   :  { %v5450_v13 = vadd.f32 %v1936_v53, %v1924_v44  ;;  %v2134_v53 = vperm.slane %v2098_v50, 2 }
 0x1b2   :  { %v2027_v54 = vpop.f32.mrf.mxu2  ;;  %v2068_v32 = vpop.f32.mrf.mxu1 }
 0x1b3   :  { %v2028_v9 = vadd.f32 %v2027_v54, %v2015_v42  ;;  %v2113_v23 = vmul.f32 %v2109_v21, %v5450_v13  ;;  %v2174_v56 = vmul.f32 %v2170_v57, %v5450_v13  ;;  %v3733_v42 = vmov 1  }
 0x1b4   :  { %3678 = vset.pattern.permute.xlu0 %v3733_v42  ;;  %v2135_v54 = vperm.slane %v2098_v50, 4  ;;  %v2136_v32 = vperm.slane %v2098_v50, 6 }
 0x1b8   :  { %v1938_v58 = vpop.f32.mrf.mxu3 }
 0x1ba   :  { %v2029_v59 = vpop.f32.mrf.mxu2 }
 0x1bb   :  { %v2141_v59 = vperm.slane %v2133_v52, 0 }
 0x1c0   :  { %v1988_v61 = vpop.f32.mrf.mxu3 }
 0x1c1   :  { %v5448_v10 = vadd.f32 %v1988_v61, %v1976_v49  ;;  %v2142_v61 = vperm.slane %v2134_v53, 0 }
 0x1c3   :  { %v2114_v19 = vmul.f32 %v2110_v11, %v5448_v10  ;;  %v2175_v34 = vmul.f32 %v2171_v27, %v5448_v10 }
 0x1c5   :  { %v2117_v29 = vadd.f32 %v2114_v19, %v2113_v23  ;;  %v2178_v37 = vadd.f32 %v2175_v34, %v2174_v56  ;;  %v2200_v19 = vperm.slane %v2192_v4, 1 }
 0x1c8   :  { %v1990_v62 = vpop.f32.mrf.mxu3 }
 0x1c9   :  { %v2143_v62 = vperm.slane %v2135_v54, 0 }
 0x1d0   :  { %v2079_v63 = vpop.f32.mrf.mxu2  ;;  %v2040_v0 = vpop.f32.mrf.mxu3 }
 0x1d1   :  { %v5452_v14 = vadd.f32 %v2040_v0, %v2028_v9  ;;  %v2080_v24 = vadd.f32 %v2079_v63, %v2067_v18  ;;  %v2144_v63 = vperm.slane %v2136_v32, 0  ;;  %v2099_v0 = vld [vmem:[%s5558_s8] sm:$0xf] }
 0x1d2   :  { %v2150_v6 = vperm.slane %v2099_v0, 0  ;;  %v2151_v7 = vperm.slane %v2099_v0, 1  ;;  %v2152_v8 = vperm.slane %v2099_v0, 2  ;;  %v2153_v9 = vperm.slane %v2099_v0, 3 }
 0x1d3   :  { %v2115_v16 = vmul.f32 %v2111_v17, %v5452_v14  ;;  %v2176_v47 = vmul.f32 %v2172_v38, %v5452_v14 }
 0x1d5   :  { %v2118_v33 = vadd.f32 %v2117_v29, %v2115_v16  ;;  %v2179_v39 = vadd.f32 %v2178_v37, %v2176_v47 }
 0x1d8   :  { %v2081_v2 = vpop.f32.mrf.mxu2  ;;  %v2042_v3 = vpop.f32.mrf.mxu3 }
 0x1d9   :  { %v2190_v2 = vperm.slane %v2098_v50, 1  ;;  %v2191_v3 = vperm.slane %v2098_v50, 3 }
 0x1db   :  { %v2198_v17 = vperm.slane %v2190_v2, 1  ;;  %v2199_v18 = vperm.slane %v2191_v3, 1 }
 0x1f0   :  { %v2092_v26 = vpop.f32.mrf.mxu3 }
 0x1f1   :  { %v5457_v28 = vadd.f32 %v2092_v26, %v2080_v24 }
 0x1f3   :  { %v2116_v55 = vmul.f32 %v2112_v1, %v5457_v28  ;;  %v2177_v36 = vmul.f32 %v2173_v51, %v5457_v28 }
 0x1f5   :  { %v2119_v60 = vadd.f32 %v2118_v33, %v2116_v55  ;;  %v2180_v40 = vadd.f32 %v2179_v39, %v2177_v36 }
 0x1f7   :  { %2120 = vadd.xlane.f32.xlu0 %v2119_v60 }
 0x1f8   :  { %v2094_v35 = vpop.f32.mrf.mxu3 }
 0x1ff   :  { %2181 = vadd.xlane.f32.xlu0 %v2180_v40 }
 0x26a   :  { %v2121_v44 = vpop.xlane.xlu0 %2120 }
 0x26b   :  { %v2125_v45 = vadd.f32 %v3679_v43, %v2121_v44 }
 0x26d   :  { %v2126_v25 = vmax.f32 %v2125_v45, 0.0 }
 0x26f   :  { %2129 = vperm.xlu1 %3676, %v2126_v25  }
 0x272   :  { %v2182_v46 = vpop.xlane.xlu0 %2181 }
 0x273   :  { %v2183_v48 = vadd.f32 %v3679_v43, %v2182_v46 }
 0x275   :  { %v2184_v49 = vmax.f32 %v2183_v48, 0.0 }
 0x277   :  { %3677 = vset.pattern.permute.xlu1 %v3733_v42 }
 0x278   :  { %2187 = vperm.xlu1 %3677, %v2184_v49  }
 0x2e1   :  { %v2130_v58 = vpop.permute.xlu1 %2129 }
 0x2e2   :  { %v2145_v11 = vmul.f32 %v2141_v59, %v2130_v58  ;;  %v2146_v12 = vmul.f32 %v2142_v61, %v2130_v58  ;;  %v2147_v21 = vmul.f32 %v2143_v62, %v2130_v58  ;;  %v2148_v15 = vmul.f32 %v2144_v63, %v2130_v58 }
 0x2e4   :  { %v2158_v22 = vadd.f32 %v2150_v6, %v2145_v11  ;;  %v2159_v30 = vadd.f32 %v2151_v7, %v2146_v12  ;;  %v2160_v23 = vadd.f32 %v2152_v8, %v2147_v21  ;;  %v2161_v24 = vadd.f32 %v2153_v9, %v2148_v15 }
 0x2ea   :  { %v2188_v1 = vpop.permute.xlu1 %2187 }
 0x2eb   :  { %v2202_v16 = vmul.f32 %v2198_v17, %v2188_v1  ;;  %v2203_v26 = vmul.f32 %v2199_v18, %v2188_v1  ;;  %v2204_v27 = vmul.f32 %v2200_v19, %v2188_v1  ;;  %v2205_v29 = vmul.f32 %v2201_v20, %v2188_v1 }
 0x2ed   :  { %v2206_v31 = vadd.f32 %v2202_v16, %v2158_v22  ;;  %v2207_v57 = vadd.f32 %v2203_v26, %v2159_v30  ;;  %v2208_v38 = vadd.f32 %v2204_v27, %v2160_v23  ;;  %v2209_v55 = vadd.f32 %v2205_v29, %v2161_v24 }
 0x2ef   :  { %v3410_v33 = vmul.f32 -1.442695, %v2206_v31  ;;  %v3411_v34 = vmul.f32 -1.442695, %v2207_v57  ;;  %v3412_v60 = vmul.f32 -1.442695, %v2208_v38 }
 0x2f0   :  { %v3413_v51 = vmul.f32 -1.442695, %v2209_v55  ;;  %v3728_v31 = vld [vmem:[%s5551_s0] sm:$0xff] }
 0x2f1   :  { %3696 = vpow2.f32 %v3410_v33 }
 0x2f2   :  { %3698 = vpow2.f32 %v3411_v34 }
 0x2f3   :  { %3700 = vpow2.f32 %v3412_v60 }
 0x2f4   :  { %3702 = vpow2.f32 %v3413_v51  ;;  %v3731_v51 = vld [vmem:[%s5551_s0 + $0x18] sm:$0xff] }
 0x2f7   :  { %v3697_v56 = vpop.eup %3696 }
 0x2f8   :  { %v3699_v47 = vpop.eup %3698  ;;  %v2222_v35 = vadd.f32 1.0, %v3697_v56 }
 0x2f9   :  { %v3701_v36 = vpop.eup %3700  ;;  %v2223_v37 = vadd.f32 1.0, %v3699_v47 }
 0x2fa   :  { %v3703_v39 = vpop.eup %3702  ;;  %v2224_v40 = vadd.f32 1.0, %v3701_v36  ;;  %3704 = vrcp.f32 %v2222_v35  ;;  %v2235_v42 = vand.u32 2147483647, %v2222_v35  ;;  %v2237_v43 = vand.u32 2147483648, %v2222_v35 }
 0x2fb   :  { %v2225_v41 = vadd.f32 1.0, %v3703_v39  ;;  %3706 = vrcp.f32 %v2223_v37  ;;  %vm2231_vm0 = vweird.f32 %v2222_v35  ;;  %vm2246_vm1 = vweird.f32 %v2223_v37 }
 0x2fc   :  { %3708 = vrcp.f32 %v2224_v40  ;;  %v2250_v49 = vand.u32 2147483647, %v2223_v37  ;;  %v2252_v50 = vand.u32 2147483648, %v2223_v37  ;;  %vm5473_vm2 = vcmp.eq.f32.partialorder %v2235_v42, 8.507059e+37 }
 0x2fd   :  { %3710 = vrcp.f32 %v2225_v41  ;;  %v2238_v54 = vor.u32 1.1754944e-38, %v2237_v43  ;;  %vm2261_vm3 = vweird.f32 %v2224_v40  ;;  %v2265_v61 = vand.u32 2147483647, %v2224_v40 }
 0x2fe   :  { %v2267_v62 = vand.u32 2147483648, %v2224_v40  ;;  %vm5477_vm6 = vcmp.eq.f32.partialorder %v2250_v49, 8.507059e+37  ;;  %v2253_v5 = vor.u32 1.1754944e-38, %v2252_v50  ;;  %vm2276_vm9 = vweird.f32 %v2225_v41 }
 0x2ff   :  { %v2280_v11 = vand.u32 2147483647, %v2225_v41  ;;  %v2282_v12 = vand.u32 2147483648, %v2225_v41  ;;  %vm2266_vm13 = vcmp.eq.f32.partialorder %v2265_v61, 8.507059e+37 }
 0x300   :  { %v3705_v44 = vpop.eup %3704  ;;  %v2268_v20 = vor.u32 1.1754944e-38, %v2267_v62 }
 0x301   :  { %v3707_v45 = vpop.eup %3706  ;;  %v2227_v25 = vmul.f32 %v3705_v44, %v2222_v35  ;;  %vm2232_vm4 = vweird.f32 %v3705_v44  ;;  %v2283_v16 = vor.u32 1.1754944e-38, %v2282_v12  ;;  %vm2281_vm15 = vcmp.eq.f32.partialorder %v2280_v11, 8.507059e+37 }
 0x302   :  { %v3709_v46 = vpop.eup %3708  ;;  %v2242_v48 = vmul.f32 %v3707_v45, %v2223_v37  ;;  %vm2247_vm5 = vweird.f32 %v3707_v45  ;;  %vm2233_vm8 = vmor %vm2231_vm0, %vm2232_vm4 }
 0x303   :  { %v2228_v52 = vsub.f32 1.0, %v2227_v25  ;;  %v2257_v32 = vmul.f32 %v3709_v46, %v2224_v40  ;;  %v3711_v58 = vpop.eup %3710  ;;  %vm2262_vm7 = vweird.f32 %v3709_v46  ;;  %vm2248_vm10 = vmor %vm2246_vm1, %vm2247_vm5 }
 0x304   :  { %v2243_v59 = vsub.f32 1.0, %v2242_v48  ;;  %v2272_v2 = vmul.f32 %v3711_v58, %v2225_v41  ;;  %vm2277_vm11 = vweird.f32 %v3711_v58  ;;  %vm2263_vm12 = vmor %vm2261_vm3, %vm2262_vm7 }
 0x305   :  { %v2229_v63 = vmul.f32 %v3705_v44, %v2228_v52  ;;  %v2258_v0 = vsub.f32 1.0, %v2257_v32  ;;  %vm2278_vm14 = vmor %vm2276_vm9, %vm2277_vm11 }
 0x306   :  { %v2244_v3 = vmul.f32 %v3707_v45, %v2243_v59  ;;  %v2273_v8 = vsub.f32 1.0, %v2272_v2 }
 0x307   :  { %v2230_v6 = vadd.f32 %v3705_v44, %v2229_v63  ;;  %v2259_v7 = vmul.f32 %v3709_v46, %v2258_v0 }
 0x308   :  { %v2245_v9 = vadd.f32 %v3707_v45, %v2244_v3  ;;  %v2274_v17 = vmul.f32 %v3711_v58, %v2273_v8 }
 0x309   :  { %v2234_v21 = vsel %vm2233_vm8, %v3705_v44, %v2230_v6  ;;  %v2260_v15 = vadd.f32 %v3709_v46, %v2259_v7 }
 0x30a   :  { %v2239_v18 = vsel %vm5473_vm2, %v2238_v54, %v2234_v21  ;;  %v2249_v19 = vsel %vm2248_vm10, %v3707_v45, %v2245_v9  ;;  %v2275_v23 = vadd.f32 %v3711_v58, %v2274_v17 }
 0x30b   :  { %v2254_v22 = vsel %vm5477_vm6, %v2253_v5, %v2249_v19  ;;  %v2264_v30 = vsel %vm2263_vm12, %v3709_v46, %v2260_v15  ;;  %v2286_v24 = vmul.f32 %v2239_v18, %v5450_v13  ;;  %v3729_v13 = vld [vmem:[%s5551_s0 + $0x8] sm:$0xff] }
 0x30c   :  { %v2269_v1 = vsel %vm2266_vm13, %v2268_v20, %v2264_v30  ;;  %v2287_v26 = vmul.f32 %v2254_v22, %v5448_v10  ;;  %v2279_v27 = vsel %vm2278_vm14, %v3711_v58, %v2275_v23  ;;  %v3730_v10 = vld [vmem:[%s5551_s0 + $0x10] sm:$0xff] }
 0x30d   :  { %v2288_v29 = vmul.f32 %v2269_v1, %v5452_v14  ;;  %v5495_v57 = vadd.f32 %v3728_v31, %v2286_v24  ;;  %v2284_v38 = vsel %vm2281_vm15, %v2283_v16, %v2279_v27 }
 0x30e   :  { %v5500_v55 = vadd.f32 %v3729_v13, %v2287_v26  ;;  %v2289_v33 = vmul.f32 %v2284_v38, %v5457_v28 }
 0x30f   :  { %v5506_v14 = vadd.f32 %v3730_v10, %v2288_v29  ;;  %v3414_v34 = vmul.f32 -1.442695, %v5495_v57 }
 0x310   :  { %v3415_v60 = vmul.f32 -1.442695, %v5500_v55  ;;  %v5513_v56 = vadd.f32 %v3731_v51, %v2289_v33 }
 0x311   :  { %3712 = vpow2.f32 %v3414_v34  ;;  %v3416_v47 = vmul.f32 -1.442695, %v5506_v14 }
 0x312   :  { %3714 = vpow2.f32 %v3415_v60  ;;  %v3417_v28 = vmul.f32 -1.442695, %v5513_v56 }
 0x313   :  { %3716 = vpow2.f32 %v3416_v47 }
 0x314   :  { %3718 = vpow2.f32 %v3417_v28 }
 0x317   :  { %v3713_v35 = vpop.eup %3712 }
 0x318   :  { %v3715_v36 = vpop.eup %3714  ;;  %v2306_v37 = vadd.f32 1.0, %v3713_v35 }
 0x319   :  { %v3717_v39 = vpop.eup %3716  ;;  %v2307_v40 = vadd.f32 1.0, %v3715_v36 }
 0x31a   :  { %v2308_v41 = vadd.f32 1.0, %v3717_v39  ;;  %3720 = vrcp.f32 %v2306_v37  ;;  %v3719_v42 = vpop.eup %3718  ;;  %v2319_v44 = vand.u32 2147483647, %v2306_v37  ;;  %v2321_v45 = vand.u32 2147483648, %v2306_v37 }
 0x31b   :  { %3722 = vrcp.f32 %v2307_v40  ;;  %v2309_v43 = vadd.f32 1.0, %v3719_v42  ;;  %v2334_v46 = vand.u32 2147483647, %v2307_v40  ;;  %vm2315_vm0 = vweird.f32 %v2306_v37 }
 0x31c   :  { %3724 = vrcp.f32 %v2308_v41  ;;  %vm2330_vm1 = vweird.f32 %v2307_v40  ;;  %v2336_v53 = vand.u32 2147483648, %v2307_v40  ;;  %vm5517_vm2 = vcmp.eq.f32.partialorder %v2319_v44, 8.507059e+37 }
 0x31d   :  { %3726 = vrcp.f32 %v2309_v43  ;;  %v2322_v58 = vor.u32 1.1754944e-38, %v2321_v45  ;;  %vm5521_vm3 = vcmp.eq.f32.partialorder %v2334_v46, 8.507059e+37  ;;  %vm2345_vm4 = vweird.f32 %v2308_v41 }
 0x31e   :  { %v2349_v0 = vand.u32 2147483647, %v2308_v41  ;;  %v2337_v6 = vor.u32 1.1754944e-38, %v2336_v53  ;;  %v2351_v7 = vand.u32 2147483648, %v2308_v41  ;;  %vm2360_vm9 = vweird.f32 %v2309_v43 }
 0x31f   :  { %v2364_v21 = vand.u32 2147483647, %v2309_v43  ;;  %v2366_v15 = vand.u32 2147483648, %v2309_v43 }
 0x320   :  { %v3721_v25 = vpop.eup %3720  ;;  %vm2350_vm13 = vcmp.eq.f32.partialorder %v2349_v0, 8.507059e+37  ;;  %v2352_v30 = vor.u32 1.1754944e-38, %v2351_v7 }
 0x321   :  { %v3723_v48 = vpop.eup %3722  ;;  %v2311_v49 = vmul.f32 %v3721_v25, %v2306_v37  ;;  %vm2316_vm5 = vweird.f32 %v3721_v25  ;;  %v2367_v27 = vor.u32 1.1754944e-38, %v2366_v15  ;;  %vm2365_vm15 = vcmp.eq.f32.partialorder %v2364_v21, 8.507059e+37 }
 0x322   :  { %v3725_v50 = vpop.eup %3724  ;;  %v2326_v52 = vmul.f32 %v3723_v48, %v2307_v40  ;;  %vm2331_vm6 = vweird.f32 %v3723_v48  ;;  %vm2317_vm8 = vmor %vm2315_vm0, %vm2316_vm5 }
 0x323   :  { %v2312_v54 = vsub.f32 1.0, %v2311_v49  ;;  %v2341_v59 = vmul.f32 %v3725_v50, %v2308_v41  ;;  %v3727_v61 = vpop.eup %3726  ;;  %vm2346_vm7 = vweird.f32 %v3725_v50  ;;  %vm2332_vm10 = vmor %vm2330_vm1, %vm2331_vm6 }
 0x324   :  { %v2327_v62 = vsub.f32 1.0, %v2326_v52  ;;  %v2356_v4 = vmul.f32 %v3727_v61, %v2309_v43  ;;  %vm2361_vm11 = vweird.f32 %v3727_v61  ;;  %vm2347_vm12 = vmor %vm2345_vm4, %vm2346_vm7 }
 0x325   :  { %v2313_v2 = vmul.f32 %v3721_v25, %v2312_v54  ;;  %v2342_v3 = vsub.f32 1.0, %v2341_v59  ;;  %vm2362_vm14 = vmor %vm2360_vm9, %vm2361_vm11 }
 0x326   :  { %v2328_v5 = vmul.f32 %v3723_v48, %v2327_v62  ;;  %v2357_v11 = vsub.f32 1.0, %v2356_v4 }
 0x327   :  { %v2314_v8 = vadd.f32 %v3721_v25, %v2313_v2  ;;  %v2343_v9 = vmul.f32 %v3725_v50, %v2342_v3 }
 0x328   :  { %v2329_v12 = vadd.f32 %v3723_v48, %v2328_v5  ;;  %v2358_v19 = vmul.f32 %v3727_v61, %v2357_v11 }
 0x329   :  { %v2318_v17 = vsel %vm2317_vm8, %v3721_v25, %v2314_v8  ;;  %v2344_v18 = vadd.f32 %v3725_v50, %v2343_v9 }
 0x32a   :  { %v2323_v20 = vsel %vm5517_vm2, %v2322_v58, %v2318_v17  ;;  %v2333_v22 = vsel %vm2332_vm10, %v3723_v48, %v2329_v12  ;;  %v2359_v1 = vadd.f32 %v3727_v61, %v2358_v19 }
 0x32b   :  { %v2338_v23 = vsel %vm5521_vm3, %v2337_v6, %v2333_v22  ;;  %v2348_v24 = vsel %vm2347_vm12, %v3725_v50, %v2344_v18  ;;  %v2370_v16 = vmul.f32 %v2323_v20, %v5495_v57 }
 0x32c   :  { %v2353_v26 = vsel %vm2350_vm13, %v2352_v30, %v2348_v24  ;;  %v2371_v29 = vmul.f32 %v2338_v23, %v5500_v55  ;;  %v2363_v31 = vsel %vm2362_vm14, %v3727_v61, %v2359_v1 }
 0x32d   :  { %v2372_v38 = vmul.f32 %v2353_v26, %v5506_v14  ;;  %2374 = vst [vmem:[%s5559_s9] sm:$0xff] %v2370_v16  ;;  %v2368_v13 = vsel %vm2365_vm15, %v2367_v27, %v2363_v31 }
 0x32e   :  { %2375 = vst [vmem:[%s5559_s9 + $0x8] sm:$0xff] %v2371_v29  ;;  %v2373_v57 = vmul.f32 %v2368_v13, %v5513_v56 }
 0x32f   :  { %2376 = vst [vmem:[%s5559_s9 + $0x10] sm:$0xff] %v2372_v38 }
 0x330   :  { %2377 = vst [vmem:[%s5559_s9 + $0x18] sm:$0xff] %v2373_v57 }

</bundles_post_ra>
